<compile_context>
chip_gen: v6e
topology: v6e:2x2x1
jax: 0.10.0
libtpu: 0.0.40
codegen_flags: <defaults>
</compile_context>

<pallas_src>
import collections

import jax
import jax.numpy as jnp
from jax.experimental import pallas as pl
from jax.experimental.pallas import tpu as pltpu


# ----------------------------- Pallas kernel ---------------------------------
def hypernet_kernel(emb_ref, w1_ref, b1_ref, w2_ref, b2_ref,
                    wh_ref, bh_ref, out_ref):
    # Tiny MLP (embedding -> features), recomputed per tile so every grid step is
    # independent (enables "parallel" semantics / megacore on v7x).
    h = jnp.dot(emb_ref[...], w1_ref[...],
                preferred_element_type=jnp.float32) + b1_ref[...]
    h = jnp.maximum(h, 0.0)                                       # ReLU
    feat = jnp.dot(h, w2_ref[...],
                   preferred_element_type=jnp.float32) + b2_ref[...]

    # Fused head matvec: (1,H)[bf16] x (H,tn)[bf16] -> f32 accumulate on the MXU.
    out_ref[...] = (jnp.dot(feat.astype(wh_ref.dtype), wh_ref[...],
                            preferred_element_type=jnp.float32) + bh_ref[...])


def hypernet_forward_pallas(emb_row, w1, b1, w2, b2, w_heads, b_heads, *, tn):
    """emb_row: (1,E); w1: (E,H); w2: (H,H); w_heads: (H, N_pad) bf16; biases (1,.) f32."""
    E = emb_row.shape[1]
    H = w1.shape[1]
    N_pad = w_heads.shape[1]
    assert N_pad % tn == 0
    n_tiles = N_pad // tn

    out = pl.pallas_call(
        hypernet_kernel,
        out_shape=jax.ShapeDtypeStruct((1, N_pad), jnp.float32),
        grid_spec=pltpu.PrefetchScalarGridSpec(
            num_scalar_prefetch=0,
            grid=(n_tiles,),
            in_specs=[
                pl.BlockSpec((1, E), lambda j: (0, 0)),   # emb (tiny, replicated)
                pl.BlockSpec((E, H), lambda j: (0, 0)),   # w1
                pl.BlockSpec((1, H), lambda j: (0, 0)),   # b1
                pl.BlockSpec((H, H), lambda j: (0, 0)),   # w2
                pl.BlockSpec((1, H), lambda j: (0, 0)),   # b2
                pl.BlockSpec((H, tn), lambda j: (0, j)),  # fused head weights (bf16)
                pl.BlockSpec((1, tn), lambda j: (0, j)),  # fused head bias (f32)
            ],
            out_specs=pl.BlockSpec((1, tn), lambda j: (0, j)),
        ),
        compiler_params=pltpu.CompilerParams(
            dimension_semantics=("parallel",)),   # tiles independent -> megacore-friendly
    )(emb_row, w1, b1, w2, b2, w_heads, b_heads)
    return out


# ------------------------------ HyperNet module -------------------------------
class HyperNetPallas:
    def __init__(self, n_nodes, embedding_dim, in_channels=1, n_kernels=10,
                 out_dim=10, hidden_dim=32, key=None):
        self.in_channels = in_channels
        self.n_kernels = n_kernels
        self.out_dim = out_dim
        E, H = embedding_dim, hidden_dim
        self.E, self.H = E, H

        # Head output sizes (same order as the OrderedDict in the PyTorch forward).
        self.head_specs = [
            ("conv1.weight", n_kernels * in_channels * 5 * 5, (n_kernels, in_channels, 5, 5)),
            ("conv1.bias",   n_kernels,                       (n_kernels,)),
            ("conv2.weight", 2 * n_kernels * n_kernels * 25,  (2 * n_kernels, n_kernels, 5, 5)),
            ("conv2.bias",   2 * n_kernels,                   (2 * n_kernels,)),
            ("fc1.weight",   320 * 50,                        (50, 320)),
            ("fc1.bias",     50,                              (50,)),
            ("fc2.weight",   10 * 50,                         (10, 50)),
            ("fc2.bias",     10,                              (10,)),
        ]
        self.N_total = sum(s for _, s, _ in self.head_specs)

        # Deterministic synthetic parameter init (PyTorch shapes, then transposed).
        key = jax.random.PRNGKey(0) if key is None else key
        ks = jax.random.split(key, 6)
        scale = 0.02
        self.embedding_table = scale * jax.random.normal(ks[0], (n_nodes, E), jnp.float32)

        # mlp: Linear(E->H), ReLU, Linear(H->H)   (PyTorch weight layout: (out, in))
        self.w1 = (scale * jax.random.normal(ks[1], (H, E), jnp.float32)).T   # (E, H)
        self.b1 = (scale * jax.random.normal(ks[2], (H,), jnp.float32))[None, :]
        self.w2 = (scale * jax.random.normal(ks[3], (H, H), jnp.float32)).T   # (H, H)
        self.b2 = (scale * jax.random.normal(ks[4], (H,), jnp.float32))[None, :]

        # 8 head Linears fused into one (H, N_total) matrix + (N_total,) bias.
        head_keys = jax.random.split(ks[5], len(self.head_specs))   # distinct key per head
        head_ws, head_bs = [], []
        for hk, (_, size, _) in zip(head_keys, self.head_specs):
            wk, bk = jax.random.split(hk, 2)
            head_ws.append((scale * jax.random.normal(wk, (size, H), jnp.float32)).T)
            head_bs.append(scale * jax.random.normal(bk, (size,), jnp.float32))
        w_heads = jnp.concatenate(head_ws, axis=1)           # (H, N_total)
        b_heads = jnp.concatenate(head_bs, axis=0)           # (N_total,)

        # Two large lane-dense tiles over the fused output dim (1-3 tiles is the sweet
        # spot: total working set < 3 MiB in bf16, far below VMEM on all generations).
        n_tiles = 2
        per_tile = -(-self.N_total // n_tiles)                # ceil
        self.tn = -(-per_tile // 128) * 128                   # round up to lane width
        self.N_pad = n_tiles * self.tn
        pad = self.N_pad - self.N_total
        # Only large operand -> bf16 (halves HBM traffic); accumulate in f32 in-kernel.
        self.w_heads = jnp.pad(w_heads, ((0, 0), (0, pad))).astype(jnp.bfloat16)
        self.b_heads = jnp.pad(b_heads, (0, pad))[None, :]    # (1, N_pad), f32

    def __call__(self, idx):
        # Embedding lookup (glue, plain JAX) -> (1, E) row vector.
        emb_row = self.embedding_table[jnp.asarray(idx, jnp.int32)][None, :]
        flat = hypernet_forward_pallas(
            emb_row, self.w1, self.b1, self.w2, self.b2,
            self.w_heads, self.b_heads, tn=self.tn)[0]        # (N_pad,)

        weights = collections.OrderedDict()
        off = 0
        for name, size, shape in self.head_specs:
            weights[name] = flat[off:off + size].reshape(shape)
            off += size
        return weights

    # Pure-JAX reference for correctness checking (same bf16 head weights / f32 accum).
    def reference(self, idx):
        emb = self.embedding_table[jnp.asarray(idx, jnp.int32)][None, :]
        h = jnp.maximum(emb @ self.w1 + self.b1, 0.0)
        feat = h @ self.w2 + self.b2
        flat = (jnp.dot(feat.astype(jnp.bfloat16), self.w_heads,
                        preferred_element_type=jnp.float32) + self.b_heads)[0]
        out, off = collections.OrderedDict(), 0
        for name, size, shape in self.head_specs:
            out[name] = flat[off:off + size].reshape(shape)
            off += size
        return out


# ----------------------------------- main -------------------------------------
if __name__ == "__main__":
    # Small shapes consistent with the module: n_nodes=4, embedding_dim=16, hidden_dim=32.
    net = HyperNetPallas(n_nodes=4, embedding_dim=16, in_channels=1,
                         n_kernels=10, out_dim=10, hidden_dim=32,
                         key=jax.random.PRNGKey(0))

    idx = 2
    weights = net(idx)
    jax.block_until_ready(jax.tree_util.tree_leaves(weights))

    # Sanity: shapes + numerical match against pure-JAX reference (bf16 head weights,
    # f32 accumulate on both paths -> tight tolerance still holds).
    ref = net.reference(idx)
    expected_shapes = {
        "conv1.weight": (10, 1, 5, 5), "conv1.bias": (10,),
        "conv2.weight": (20, 10, 5, 5), "conv2.bias": (20,),
        "fc1.weight": (50, 320), "fc1.bias": (50,),
        "fc2.weight": (10, 50), "fc2.bias": (10,),
    }
    for name, arr in weights.items():
        assert arr.shape == expected_shapes[name], (name, arr.shape)
        assert jnp.allclose(arr, ref[name], atol=5e-5, rtol=1e-3), name

    print("KERNEL_OK")
</pallas_src>

<mosaic_0001>
module attributes {stable_mosaic.version = 11 : i64} {
  func.func @hypernet_kernel(%arg0: i32, %arg1: memref<1x16xf32, #tpu.memory_space<vmem>>, %arg2: memref<16x32xf32, #tpu.memory_space<vmem>>, %arg3: memref<1x32xf32, #tpu.memory_space<vmem>>, %arg4: memref<32x32xf32, #tpu.memory_space<vmem>>, %arg5: memref<1x32xf32, #tpu.memory_space<vmem>>, %arg6: memref<32x11008xbf16, #tpu.memory_space<vmem>>, %arg7: memref<1x11008xf32, #tpu.memory_space<vmem>>, %arg8: memref<1x11008xf32, #tpu.memory_space<vmem>>) attributes {dimension_semantics = [#tpu.dimension_semantics<parallel>], iteration_bounds = array<i64: 2>, scalar_prefetch = 0 : i64, scratch_operands = 0 : i64, tpu.core_type = #tpu.core_type<tc>, window_params = [{pipeline_mode = #tpu.pipeline_mode<synchronous>, transform_indices = @transform_0, window_bounds = array<i64: 1, 16>}, {pipeline_mode = #tpu.pipeline_mode<synchronous>, transform_indices = @transform_1, window_bounds = array<i64: 16, 32>}, {pipeline_mode = #tpu.pipeline_mode<synchronous>, transform_indices = @transform_2, window_bounds = array<i64: 1, 32>}, {pipeline_mode = #tpu.pipeline_mode<synchronous>, transform_indices = @transform_3, window_bounds = array<i64: 32, 32>}, {pipeline_mode = #tpu.pipeline_mode<synchronous>, transform_indices = @transform_4, window_bounds = array<i64: 1, 32>}, {transform_indices = @transform_5, window_bounds = array<i64: 32, 11008>}, {transform_indices = @transform_6, window_bounds = array<i64: 1, 11008>}, {transform_indices = @transform_7, window_bounds = array<i64: 1, 11008>}]} {
    %c0 = arith.constant 0 : index
    %c0_0 = arith.constant 0 : index
    %0 = vector.load %arg1[%c0, %c0_0] : memref<1x16xf32, #tpu.memory_space<vmem>>, vector<1x16xf32>
    %c0_1 = arith.constant 0 : index
    %c0_2 = arith.constant 0 : index
    %1 = vector.load %arg2[%c0_1, %c0_2] : memref<16x32xf32, #tpu.memory_space<vmem>>, vector<16x32xf32>
    %cst = arith.constant dense<0.000000e+00> : vector<1x32xf32>
    %2 = tpu.matmul %0, %1, %cst {dimension_numbers = #tpu.dot_dimension_numbers<[1], [0], [0], [1], [0, 0, 1, 1], [], []>} : vector<1x16xf32>, vector<16x32xf32>, vector<1x32xf32> -> vector<1x32xf32>
    %c0_3 = arith.constant 0 : index
    %c0_4 = arith.constant 0 : index
    %3 = vector.load %arg3[%c0_3, %c0_4] : memref<1x32xf32, #tpu.memory_space<vmem>>, vector<1x32xf32>
    %4 = arith.addf %2, %3 : vector<1x32xf32>
    %cst_5 = arith.constant 0.000000e+00 : f32
    %5 = vector.broadcast %cst_5 : f32 to vector<1x32xf32>
    %6 = arith.maximumf %4, %5 : vector<1x32xf32>
    %c0_6 = arith.constant 0 : index
    %c0_7 = arith.constant 0 : index
    %7 = vector.load %arg4[%c0_6, %c0_7] : memref<32x32xf32, #tpu.memory_space<vmem>>, vector<32x32xf32>
    %cst_8 = arith.constant dense<0.000000e+00> : vector<1x32xf32>
    %8 = tpu.matmul %6, %7, %cst_8 {dimension_numbers = #tpu.dot_dimension_numbers<[1], [0], [0], [1], [0, 0, 1, 1], [], []>} : vector<1x32xf32>, vector<32x32xf32>, vector<1x32xf32> -> vector<1x32xf32>
    %c0_9 = arith.constant 0 : index
    %c0_10 = arith.constant 0 : index
    %9 = vector.load %arg5[%c0_9, %c0_10] : memref<1x32xf32, #tpu.memory_space<vmem>>, vector<1x32xf32>
    %10 = arith.addf %8, %9 : vector<1x32xf32>
    %11 = arith.truncf %10 : vector<1x32xf32> to vector<1x32xbf16>
    %c0_11 = arith.constant 0 : index
    %c0_12 = arith.constant 0 : index
    %12 = vector.load %arg6[%c0_11, %c0_12] : memref<32x11008xbf16, #tpu.memory_space<vmem>>, vector<32x11008xbf16>
    %cst_13 = arith.constant dense<0.000000e+00> : vector<1x11008xf32>
    %13 = tpu.matmul %11, %12, %cst_13 {dimension_numbers = #tpu.dot_dimension_numbers<[1], [0], [0], [1], [0, 0, 1, 1], [], []>} : vector<1x32xbf16>, vector<32x11008xbf16>, vector<1x11008xf32> -> vector<1x11008xf32>
    %c0_14 = arith.constant 0 : index
    %c0_15 = arith.constant 0 : index
    %14 = vector.load %arg7[%c0_14, %c0_15] : memref<1x11008xf32, #tpu.memory_space<vmem>>, vector<1x11008xf32>
    %15 = arith.addf %13, %14 : vector<1x11008xf32>
    %c0_16 = arith.constant 0 : index
    %c0_17 = arith.constant 0 : index
    %16 = vector.load %arg8[%c0_16, %c0_17] : memref<1x11008xf32, #tpu.memory_space<vmem>>, vector<1x11008xf32>
    tpu.vector_store %arg8[%c0_16, %c0_17], %15 {strides = array<i32>} : memref<1x11008xf32, #tpu.memory_space<vmem>>, vector<1x11008xf32>,
    return
  }
  func.func @transform_0(%arg0: i32) -> (i32, i32) {
    %c0_i32 = arith.constant 0 : i32
    %c0_i32_0 = arith.constant 0 : i32
    %c0_i32_1 = arith.constant 0 : i32
    return %c0_i32, %c0_i32_0 : i32, i32
  }
  func.func @transform_1(%arg0: i32) -> (i32, i32) {
    %c0_i32 = arith.constant 0 : i32
    %c0_i32_0 = arith.constant 0 : i32
    %c0_i32_1 = arith.constant 0 : i32
    return %c0_i32, %c0_i32_0 : i32, i32
  }
  func.func @transform_2(%arg0: i32) -> (i32, i32) {
    %c0_i32 = arith.constant 0 : i32
    %c0_i32_0 = arith.constant 0 : i32
    %c0_i32_1 = arith.constant 0 : i32
    return %c0_i32, %c0_i32_0 : i32, i32
  }
  func.func @transform_3(%arg0: i32) -> (i32, i32) {
    %c0_i32 = arith.constant 0 : i32
    %c0_i32_0 = arith.constant 0 : i32
    %c0_i32_1 = arith.constant 0 : i32
    return %c0_i32, %c0_i32_0 : i32, i32
  }
  func.func @transform_4(%arg0: i32) -> (i32, i32) {
    %c0_i32 = arith.constant 0 : i32
    %c0_i32_0 = arith.constant 0 : i32
    %c0_i32_1 = arith.constant 0 : i32
    return %c0_i32, %c0_i32_0 : i32, i32
  }
  func.func @transform_5(%arg0: i32) -> (i32, i32) {
    %c0_i32 = arith.constant 0 : i32
    %c0_i32_0 = arith.constant 0 : i32
    return %c0_i32, %arg0 : i32, i32
  }
  func.func @transform_6(%arg0: i32) -> (i32, i32) {
    %c0_i32 = arith.constant 0 : i32
    %c0_i32_0 = arith.constant 0 : i32
    return %c0_i32, %arg0 : i32, i32
  }
  func.func @transform_7(%arg0: i32) -> (i32, i32) {
    %c0_i32 = arith.constant 0 : i32
    %c0_i32_0 = arith.constant 0 : i32
    return %c0_i32, %arg0 : i32, i32
  }
}

</mosaic_0001>

<bundles_post_ra>
// kernel: tpu_custom_call.1
= control target key start
LH: loop header
LB: loop body
LE: loop exit
PB: predicated region body
PF: predicated region fallthrough
CT: control target
= control target key end

     0   :  { %s6312_s0 = inlined_call_operand.hbm [shape: f32[1,16], index: 0, kind: input, shape index: {}]   ;;  %s6313_s1 = inlined_call_operand.hbm [shape: f32[16,32], index: 1, kind: input, shape index: {}]   ;;  %s6314_s2 = inlined_call_operand.hbm [shape: f32[1,32], index: 2, kind: input, shape index: {}]   ;;  %s6315_s3 = inlined_call_operand.hbm [shape: f32[32,32], index: 3, kind: input, shape index: {}]   ;;  %s6316_s4 = inlined_call_operand.hbm [shape: f32[1,32], index: 4, kind: input, shape index: {}]   ;;  %s6317_s5 = inlined_call_operand.hbm [shape: bf16[32,22016], index: 5, kind: input, shape index: {}]   ;;  %s6318_s6 = inlined_call_operand.hbm [shape: f32[1,22016], index: 6, kind: input, shape index: {}]   ;;  %s6319_s7 = inlined_call_operand.hbm [shape: f32[1,22016], index: 7, kind: output, shape index: {}]  }
   0x1   :  { %6328 = sst [smem:[#allocation21_spill]] %s6313_s1 }
   0x2   :  { %6329 = sst [smem:[#allocation22_spill]] %s6315_s3 }
   0x3   :  { %6330 = sst [smem:[#allocation23_spill]] %s6317_s5 }
   0x4   :  { %12 = vsyncpa [#allocation3], 0 }
   0x5   :  { %13 = vsyncpa [#allocation6], 0 }
   0x6   :  { %14 = vsyncpa [#allocation9], 0 }
   0x7   :  { %15 = vsyncpa [#allocation12], 0 }
   0x8   :  { %17 = vsyncpa [#allocation12 + $0x1], 0 }
   0x9   :  { %18 = vsyncpa [#allocation4], 0 }
   0xa   :  { %20 = vsyncpa [#allocation4 + $0x1], 0  ;;  %s5568_s24 = smov 0   ;;  %s5570_s25 = smov 0  }
   0xb   :  { %s5572_s26 = smov 0   ;;  %s5574_s27 = smov 0  }
   0xc LB: > { %s5589_s28 = sadd.s32 4294967295, %s5509_s27   ;;  %s4609_s29 = sadd.s32 4294967294, %s5509_s27   ;;  %s5509_s27 = sphi %s5574_s27, %s6362_s27   ;;  %s5505_s26 = sphi %s5572_s26, %s6361_s26   ;;  %s5501_s25 = sphi %s5570_s25, %s6360_s25   ;;  %s5497_s24 = sphi %s5568_s24, %s6359_s24  }
   0xd   : > { %p151_p0 = scmp.ne.s32.totalorder %s5501_s25, %s5497_s24  ;;  %p6320_p1 = scmp.eq.s32.totalorder %s5589_s28, 0 }
   0xe   : > { %p207_p3 = scmp.eq.s32.totalorder %s4609_s29, 1  ;;  %p4610_p5 = scmp.ge.s32.totalorder %s5509_s27, 1 }
   0xf   : > { %p5598_p4 = por %p6320_p1, %p151_p0  ;;  %p214_p7 = scmp.lt.s32.totalorder %s5509_s27, 3 }
  0x10   : > { %p5603_p6 = por %p207_p3, %p151_p0  ;;  %s5511_s10 = smov [#allocation5]  }
  0x11   : > { %s6331_s30 = scalar_select %p5598_p4, 1, 0 }
  0x12   : > { %s6332_s8 = scalar_select %p5603_p6, 1, 0 }
  0x13   : > { %p5608_p8 = pnand %p4610_p5, %p214_p7  ;;  %s237_s11 = sshll.u32 %s5511_s10, 4  ;;  %s238_s11 = int_to_ptr.vmem [resolvable:$true] %s237_s11 }
  0x14   : > { %s5512_s13 = smov [#allocation8]   ;;  %s5258_s16 = scalar_lea.vmem %s238_s11, 256 }
  0x15   : > { %s6333_s9 = scalar_select %p5608_p8, 1, 0 }
  0x16   : > { %p4904_p9 = pneg %p5608_p8  ;;  %s261_s14 = sshll.u32 %s5512_s13, 4  ;;  %s262_s14 = int_to_ptr.vmem [resolvable:$true] %s261_s14 }
  0x17   : > { %p5259_p13 = scmp.ne.s32.totalorder %s238_s11, %s5258_s16  ;;  %p5266_p5 = scmp.lt.s32.totalorder %s238_s11, %s238_s11 }
  0x18   : > { %p5617_p11 = pnand %p4904_p9, %p6320_p1  ;;  %p5267_p7 = scmp.lt.s32.totalorder %s5258_s16, %s5258_s16 }
  0x1a   : > { %s6334_s12 = scalar_select %p5617_p11, 1, 0 }
  0x1b   : > { %p5623_p12 = pneg %p5617_p11  ;;  %p5268_p9 = por %p5267_p7, %p5266_p5 }
  0x1d   : > { %p5261_p0 = pnand %p5259_p13, %p5623_p12 }
  0x1f   : > { %p5262_p3 = pneg %p5261_p0 }
  0x21   : > { %p5269_p10 = pnand %p5268_p9, %p5262_p3 }
  0x23   : > { %5272 = shalt.err (!%p5269_p10)
}
  0x24   : > { %s5513_s17 = smov 128   ;;  %s5514_s18 = smov 8  }
  0x25   : > { %s6336_s1 = sld [smem:[#allocation21_spill]]  ;;  %s5284_s21 = scalar_lea.vmem %s262_s14, 512 }
  0x26   : > { %p5285_p1 = scmp.ne.s32.totalorder %s262_s14, %s5284_s21  ;;  %p5292_p0 = scmp.lt.s32.totalorder %s262_s14, %s262_s14 }
  0x27   : > { %p5293_p6 = scmp.lt.s32.totalorder %s5284_s21, %s5284_s21 }
  0x28   : > { %p5287_p2 = pnand %p5285_p1, %p5623_p12 }
  0x29   : > { %p5294_p4 = por %p5293_p6, %p5292_p0 }
  0x2a   : > { %p5288_p13 = pneg %p5287_p2 }
  0x2b   : > { %4910 = dma.hbm_to_vmem [thread:$0]  (!%p5617_p11), %s6336_s1, 256, %s238_s11, [#allocation6], %s5513_s17, %s5513_s17, %s5514_s18  }
  0x2c   : > { %p5295_p5 = pnand %p5294_p4, %p5288_p13 }
  0x2e   : > { %5298 = shalt.err (!%p5295_p5)
}
  0x2f   : > { %s6337_s3 = sld [smem:[#allocation22_spill]]  ;;  %s5642_s29 = sadd.s32 1, %s5509_s27  }
  0x30   : > { %s138_s10 = sadd.s32 1, %s5505_s26  ;;  %s135_s11 = ssub.s32 %s5509_s27, %s5642_s29 }
  0x31   : > { %p145_p1 = scmp.ne.s32.totalorder %s5505_s26, %s5501_s25  ;;  %p136_p2 = scmp.eq.s32.totalorder %s135_s11, 0 }
  0x32   : > { %p146_p4 = scmp.eq.s32.totalorder %s5509_s27, 0  ;;  %p6338_p6 = scmp.eq.s32.totalorder %s5589_s28, 1 }
  0x33   : > { %p4936_p3 = scmp.lt.s32.totalorder %s5509_s27, 2  ;;  %s286_s19 = sand.u32 1, %s5509_s27  }
  0x34   : > { %p5652_p10 = por %p6338_p6, %p145_p1  ;;  %p147_p7 = por %p146_p4, %p145_p1 }
  0x35   : > { %4916 = dma.hbm_to_vmem [thread:$0]  (!%p5617_p11), %s6337_s3, 512, %s262_s14, [#allocation9], %s5513_s17, %s5513_s17, %s5514_s18  }
  0x36   : > { %s6339_s13 = scalar_select %p5652_p10, 1, 0 }
  0x37   : > { %s5658_s16 = scalar_select %p136_p2, %s5505_s26, %s138_s10  }
  0x38   : > { %s6322_s20 = sand.u32 1, %s5505_s26   ;;  %p5664_p9 = pnand %p4936_p3, %p147_p7 }
  0x39   : > { %6340 = sst [smem:[#allocation20_spill]] %s5658_s16  ;;  %s4874_s14 = smul.u32 1376, %s6322_s20 }
  0x3a   : > { %s4845_s18 = smul.u32 5504, %s5509_s27  ;;  %s6342_s5 = sld [smem:[#allocation23_spill]] }
  0x3b   : > { %s290_s10 = scalar_lea.vmem [#allocation11], %s4874_s14  ;;  %s5676_s20 = scalar_lea.sflag [#allocation12], %s286_s19 }
  0x3c   : > { %s297_s11 = sshll.u32 %s290_s10, 4  ;;  %p6327_p0 = pneg %p5664_p9  ;;  %s5674_s11 = int_to_ptr.vmem [resolvable:$true] %s297_s11 }
  0x40   : > { %s5672_s23 = scalar_lea.hbm %s6342_s5, %s4845_s18  ;;  %s5304_s22 = scalar_lea.hbm %s6342_s5, 44032 }
  0x41   : > { %s5299_s1 = scalar_lea.hbm %s5672_s23, 22016  ;;  %p5305_p2 = scmp.lt.s32.totalorder %s5672_s23, %s6342_s5 }
  0x42   : > { %p5300_p13 = scmp.ne.s32.totalorder %s5672_s23, %s5299_s1  ;;  %p5306_p4 = scmp.lt.s32.totalorder %s5304_s22, %s5299_s1 }
  0x44   : > { %p5302_p5 = pnand %p6327_p0, %p5300_p13  ;;  %p5307_p6 = por %p5306_p4, %p5305_p2 }
  0x46   : > { %p5303_p1 = pneg %p5302_p5 }
  0x48   : > { %p5308_p3 = pnand %p5307_p6, %p5303_p1 }
  0x4a   : > { %5311 = shalt.err (!%p5308_p3)
}
  0x4b   : > { %s5312_s19 = scalar_lea.vmem %s5674_s11, 22016  ;;  %s5515_s14 = smov [#allocation11]  }
  0x4c   : > { %p5313_p7 = scmp.ne.s32.totalorder %s5674_s11, %s5312_s19  ;;  %s5317_s10 = sshll.u32 %s5515_s14, 4  ;;  %s5318_s10 = int_to_ptr.vmem [resolvable:$false] %s5317_s10 }
  0x4d   : > { %s5319_s21 = scalar_lea.vmem %s5318_s10, 44032  ;;  %p5320_p10 = scmp.lt.s32.totalorder %s5674_s11, %s5318_s10 }
  0x4e   : > { %p5315_p13 = pnand %p5313_p7, %p6327_p0  ;;  %p5321_p8 = scmp.lt.s32.totalorder %s5319_s21, %s5312_s19 }
  0x50   : > { %p5316_p5 = pneg %p5315_p13  ;;  %p5322_p11 = por %p5321_p8, %p5320_p10 }
  0x52   : > { %p5323_p2 = pnand %p5322_p11, %p5316_p5 }
  0x54   : > { %5326 = shalt.err (!%p5323_p2)
}
  0x55   : > { %s5516_s1 = smov 11008   ;;  %s5517_s3 = smov 5504  }
  0x56   : > { %s5518_s16 = smov 344   ;;  %s5519_s18 = smov [#allocation2]  }
  0x57   : > { %4923 = dma.hbm_to_vmem [thread:$0]  (!%p5664_p9), %s5672_s23, 22016, %s5674_s11, %s5676_s20, %s5516_s1, %s5517_s3, %s5518_s16  }
  0x58   : > { %s227_s22 = sshll.u32 %s5519_s18, 4  ;;  %s5520_s14 = smov [#allocation7]   ;;  %s228_s22 = int_to_ptr.vmem [resolvable:$true] %s227_s22 }
  0x59   : > { %s251_s5 = sshll.u32 %s5520_s14, 4  ;;  %s5338_s10 = scalar_lea.vmem %s228_s22, 16  ;;  %s252_s5 = int_to_ptr.vmem [resolvable:$true] %s251_s5 }
  0x5a   : > { %p5339_p1 = scmp.ne.s32.totalorder %s228_s22, %s5338_s10  ;;  %s5345_s19 = scalar_lea.vmem %s228_s22, 32 }
  0x5b   : > { %p5346_p10 = scmp.lt.s32.totalorder %s228_s22, %s228_s22  ;;  %p5347_p4 = scmp.lt.s32.totalorder %s5345_s19, %s5338_s10 }
  0x5c   : > { %p5341_p8 = pnand %p5339_p1, %p5623_p12 }
  0x5d   : > { %p5348_p6 = por %p5347_p4, %p5346_p10 }
  0x5e   : > { %p5342_p11 = pneg %p5341_p8 }
  0x60   : > { %p5349_p3 = pnand %p5348_p6, %p5342_p11 }
  0x62   : > { %5352 = shalt.err (!%p5349_p3)
}
  0x63   : > { %p6343_p7 = scmp.ne.s32.totalorder %s6334_s12, 0  ;;  %s5364_s11 = scalar_lea.vmem %s252_s5, 16 }
  0x64   : > { %p5365_p13 = scmp.ne.s32.totalorder %s252_s5, %s5364_s11  ;;  %s5371_s1 = scalar_lea.vmem %s252_s5, 32 }
  0x65   : > { %4907 = dma.hbm_to_vmem [thread:$0]  (!%p6343_p7), %s6312_s0, 16, %s228_s22, [#allocation3]  }
  0x66   : > { %p5367_p5 = pnand %p5365_p13, %p5623_p12  ;;  %p5372_p1 = scmp.lt.s32.totalorder %s252_s5, %s252_s5 }
  0x67   : > { %p5373_p8 = scmp.lt.s32.totalorder %s5371_s1, %s5364_s11 }
  0x68   : > { %p5368_p2 = pneg %p5367_p5 }
  0x69   : > { %p5374_p0 = por %p5373_p8, %p5372_p1 }
  0x6b   : > { %p5375_p10 = pnand %p5374_p0, %p5368_p2 }
  0x6d   : > { %5378 = shalt.err (!%p5375_p10)
}
  0x6e   : > { %4913 = dma.hbm_to_vmem [thread:$0]  (!%p6343_p7), %s6314_s2, 16, %s252_s5, [#allocation6]  }
  0x6f   : > { %s5521_s18 = smov [#allocation10]   ;;  %s6344_s14 = sand.u32 1, %s5505_s26  }
  0x70   : > { %s275_s22 = sshll.u32 %s5521_s18, 4  ;;  %s4875_s10 = smul.u32 86, %s6344_s14  ;;  %s276_s22 = int_to_ptr.vmem [resolvable:$true] %s275_s22 }
  0x71   : > { %s4846_s19 = smul.u32 1376, %s5509_s27  ;;  %s5390_s21 = scalar_lea.vmem %s276_s22, 16 }
  0x72   : > { %p5391_p11 = scmp.ne.s32.totalorder %s276_s22, %s5390_s21  ;;  %s5397_s23 = scalar_lea.vmem %s276_s22, 32 }
  0x73   : > { %p5398_p6 = scmp.lt.s32.totalorder %s276_s22, %s276_s22  ;;  %p5399_p3 = scmp.lt.s32.totalorder %s5397_s23, %s5390_s21 }
  0x74   : > { %p5393_p0 = pnand %p5391_p11, %p5623_p12 }
  0x75   : > { %p5400_p13 = por %p5399_p3, %p5398_p6 }
  0x76   : > { %p5394_p4 = pneg %p5393_p0 }
  0x78   : > { %p5401_p5 = pnand %p5400_p13, %p5394_p4 }
  0x7a   : > { %5404 = shalt.err (!%p5401_p5)
}
  0x7b   : > { %4919 = dma.hbm_to_vmem [thread:$0]  (!%p6343_p7), %s6316_s4, 16, %s276_s22, [#allocation9]  }
  0x7c   : > { %s317_s16 = scalar_lea.hbm %s6318_s6, %s4846_s19  ;;  %s311_s15 = scalar_lea.vmem [#allocation13], %s4875_s10 }
  0x7d   : > { %s319_s18 = sshll.u32 %s311_s15, 4  ;;  %s5405_s14 = scalar_lea.hbm %s317_s16, 1376  ;;  %s320_s18 = int_to_ptr.vmem [resolvable:$true] %s319_s18 }
  0x7e   : > { %p5406_p12 = scmp.ne.s32.totalorder %s317_s16, %s5405_s14  ;;  %p6345_p2 = pneg %p5664_p9 }
  0x7f   : > { %s5410_s23 = scalar_lea.hbm %s6318_s6, 2752  ;;  %p5411_p7 = scmp.lt.s32.totalorder %s317_s16, %s6318_s6 }
  0x80   : > { %p5408_p1 = pnand %p5406_p12, %p6345_p2  ;;  %p5412_p10 = scmp.lt.s32.totalorder %s5410_s23, %s5405_s14 }
  0x82   : > { %p5409_p8 = pneg %p5408_p1  ;;  %p5413_p11 = por %p5412_p10, %p5411_p7 }
  0x84   : > { %p5414_p0 = pnand %p5413_p11, %p5409_p8 }
  0x86   : > { %5417 = shalt.err (!%p5414_p0)
}
  0x87   : > { %s5418_s22 = scalar_lea.vmem %s320_s18, 1376  ;;  %p6346_p6 = pmov %p6345_p2 }
  0x88   : > { %p5419_p4 = scmp.ne.s32.totalorder %s320_s18, %s5418_s22  ;;  %s5522_s10 = smov [#allocation13]  }
  0x89   : > { %s5423_s19 = sshll.u32 %s5522_s10, 4  ;;  %s5424_s19 = int_to_ptr.vmem [resolvable:$false] %s5423_s19 }
  0x8a   : > { %p5421_p3 = pnand %p5419_p4, %p6346_p6  ;;  %s5425_s1 = scalar_lea.vmem %s5424_s19, 2752 }
  0x8b   : > { %p5426_p5 = scmp.lt.s32.totalorder %s320_s18, %s5424_s19  ;;  %p5427_p12 = scmp.lt.s32.totalorder %s5425_s1, %s5418_s22 }
  0x8c   : > { %p5422_p13 = pneg %p5421_p3 }
  0x8d   : > { %p5428_p2 = por %p5427_p12, %p5426_p5 }
  0x8f   : > { %p5429_p1 = pnand %p5428_p2, %p5422_p13 }
  0x91   : > { %5432 = shalt.err (!%p5429_p1)
}
  0x92   : > { %4926 = dma.hbm_to_vmem [thread:$0]  (!%p5664_p9), %s317_s16, 1376, %s320_s18, %s5676_s20  }
  0x93   : > { %p6347_p8 = scmp.ne.s32.totalorder %s6333_s9, 0 }
  0x94   : > { %p6348_p7 = scmp.eq.s32.totalorder (!%p6347_p8), %s5589_s28, 0 }
  0x95   : > { %328 = sbr.rel (%p6347_p8) target bundleno = 953 (0x3b9), region = 48 }
  0x9a   : > { %5476 = dma.done.wait (%p6348_p7), [#allocation3], 16   ;;  %p6349_p10 = pmov %p6348_p7 }
  0x9b   : > { %p6350_p11 = pmov %p6348_p7 }
  0x9c   : > { %5478 = vsyncadd (%p6349_p10), [#allocation3], 4294967280 }
  0x9d   : > { %5480 = dma.done.wait (%p6350_p11), [#allocation6], 272   ;;  %p6351_p0 = pmov %p6348_p7 }
  0x9f   : > { %5482 = vsyncadd (%p6351_p0), [#allocation6], 4294967024  ;;  %p6352_p4 = pmov %p6351_p0 }
  0xa0   : > { %p6353_p9 = pmov %p6351_p0 }
  0xa1   : > { %5484 = dma.done.wait (%p6352_p4), [#allocation9], 528  }
  0xa2   : > { %5486 = vsyncadd (%p6353_p9), [#allocation9], 4294966768  ;;  %s350_s9 = sand.u32 1, %s5589_s28   ;;  %s5761_s20 = sand.u32 1, %s5501_s25  }
  0xa3   : > { %s4876_s17 = smul.u32 1376, %s5761_s20  ;;  %s351_s3 = scalar_lea.sflag [#allocation12], %s350_s9 }
  0xa4   : > { %p6354_p6 = scmp.ne.s32.totalorder %s6331_s30, 0 }
  0xa5   : > { %s5764_s16 = scalar_lea.vmem [#allocation11], %s4876_s17 }
  0xa6   : > { %5488 = dma.done.wait (%p6354_p6), %s351_s3, 23392  }
  0xa7   : > { %5490 = vsyncadd (%p6354_p6), %s351_s3, 4294943904  ;;  %v5523_v0 = vmov 0.0   ;;  %vm5524_vm0 = vmmov 0   ;;  %v405_v1 = vld [vmem:[#allocation5 + $0x8] sm:$0xff]  ;;  %v404_v2 = vld [vmem:[#allocation5] sm:$0xff]  ;;  %vm407_vm1 = vcmask 130048  }
  0xa8   : > { %4856 = vmatprep.subr.mxu0 %v5523_v0  ;;  %4860 = vmatprep.mubr.msk.f32.mxu0 %vm5524_vm0, %v5523_v0  ;;  %v403_v3 = vld [vmem:[#allocation2] sm:$0x1]  ;;  %v485_v4 = vld [vmem:[#allocation8 + $0x18] sm:$0xff]  ;;  %v484_v5 = vld [vmem:[#allocation8 + $0x10] sm:$0xff]  ;;  %vm487_vm2 = vcmask 261120   ;;  %v5525_v22 = vmov 0  }
  0xa9   : > { %4863 = vmatprep.subr.mxu1 %v5523_v0  ;;  %4871 = vmatprep.mubr.msk.f32.mxu1 %vm5524_vm0, %v5523_v0  ;;  %v483_v6 = vld [vmem:[#allocation8 + $0x8] sm:$0xff]  ;;  %v482_v7 = vld [vmem:[#allocation8] sm:$0xff]  ;;  %v406_v11 = vld [vmem:[#allocation7] sm:$0x1]  ;;  %s4877_s30 = smul.u32 86, %s5761_s20  ;;  %s4455_s11 = scalar_lea.sflag [#allocation4], %s5761_s20 }
  0xaa   : > { %4857 = vmatpush3.msra.mxu0 %v405_v1  ;;  %4864 = vmatpush3.msra.mxu1 %v485_v4  ;;  %v4989_v8 = vld [vmem:[%s5764_s16 + $0x2b0] ss:$344 sps:$4 sm:$0xff]   ;;  %v4991_v9 = vld [vmem:[%s5764_s16 + $0x2b4] ss:$344 sps:$4 sm:$0xff]   ;;  %v4997_v17 = vld [vmem:[%s5764_s16 + $0x4] ss:$344 sps:$4 sm:$0xff]  }
  0xab   : > { %4858 = vmatprep.subr.mxu0 %v5523_v0  ;;  %4865 = vmatprep.subr.mxu1 %v5523_v0  ;;  %v4994_v10 = vld [vmem:[%s5764_s16 + $0x2bc] ss:$344 sps:$4 sm:$0xff]   ;;  %v4992_v15 = vld [vmem:[%s5764_s16 + $0x2b8] ss:$344 sps:$4 sm:$0xff]   ;;  %v5000_v18 = vld [vmem:[%s5764_s16 + $0xc] ss:$344 sps:$4 sm:$0xff]  }
  0xac   : > { %4859 = vmatpush3.msra.mxu0 %v404_v2  ;;  %4866 = vmatpush3.msra.mxu1 %v484_v5  ;;  %v4995_v19 = vld [vmem:[%s5764_s16] ss:$344 sps:$4 sm:$0xff]   ;;  %v5003_v21 = vld [vmem:[%s5764_s16 + $0x2c4] ss:$344 sps:$4 sm:$0xff]   ;;  %v5009_v31 = vld [vmem:[%s5764_s16 + $0x14] ss:$344 sps:$4 sm:$0xff]  }
  0xad   : > { %4861 = vmatmul.mubr.msk.f32.vlgmr.msra.gmra.mxu0 %vm407_vm1, %v403_v3  ;;  %4867 = vmatprep.subr.mxu1 %v5523_v0  ;;  %v4998_v20 = vld [vmem:[%s5764_s16 + $0x8] ss:$344 sps:$4 sm:$0xff]   ;;  %v5006_v23 = vld [vmem:[%s5764_s16 + $0x2cc] ss:$344 sps:$4 sm:$0xff]   ;;  %v486_v24 = vld [vmem:[#allocation10] sm:$0x1] }
  0xae   : > { %4868 = vmatpush3.msra.mxu1 %v483_v6  ;;  %2061 = vmatprep.subr.bf16.mxu0 %v4991_v9  ;;  %v5001_v28 = vld [vmem:[%s5764_s16 + $0x2c0] ss:$344 sps:$4 sm:$0xff]   ;;  %v5012_v32 = vld [vmem:[%s5764_s16 + $0x1c] ss:$344 sps:$4 sm:$0xff]   ;;  %v5007_v33 = vld [vmem:[%s5764_s16 + $0x10] ss:$344 sps:$4 sm:$0xff]  }
  0xaf   : > { %4869 = vmatprep.subr.mxu1 %v5523_v0  ;;  %2062 = vmatpush1.bf16.msra.mxu0 %v4989_v8  ;;  %v5004_v29 = vld [vmem:[%s5764_s16 + $0x2c8] ss:$344 sps:$4 sm:$0xff]   ;;  %v5010_v34 = vld [vmem:[%s5764_s16 + $0x18] ss:$344 sps:$4 sm:$0xff]   ;;  %v5015_v35 = vld [vmem:[%s5764_s16 + $0x2d4] ss:$344 sps:$4 sm:$0xff]  }
  0xb0   : > { %4870 = vmatpush3.msra.mxu1 %v482_v7  ;;  %2063 = vmatprep.subr.bf16.mxu0 %v4997_v17  ;;  %v5018_v36 = vld [vmem:[%s5764_s16 + $0x2dc] ss:$344 sps:$4 sm:$0xff]   ;;  %v5013_v37 = vld [vmem:[%s5764_s16 + $0x2d0] ss:$344 sps:$4 sm:$0xff]   ;;  %v5024_v40 = vld [vmem:[%s5764_s16 + $0x2c] ss:$344 sps:$4 sm:$0xff]  }
  0xb1   : > { %2102 = vmatprep.subr.bf16.mxu1 %v4994_v10  ;;  %2081 = vmatprep.mubr.bf16.mxu0 %v5525_v22  ;;  %v5016_v38 = vld [vmem:[%s5764_s16 + $0x2d8] ss:$344 sps:$4 sm:$0xff]   ;;  %v5021_v39 = vld [vmem:[%s5764_s16 + $0x24] ss:$344 sps:$4 sm:$0xff]   ;;  %v5022_v42 = vld [vmem:[%s5764_s16 + $0x28] ss:$344 sps:$4 sm:$0xff]  }
  0xb2   : > { %v5019_v41 = vld [vmem:[%s5764_s16 + $0x20] ss:$344 sps:$4 sm:$0xff]   ;;  %v5027_v43 = vld [vmem:[%s5764_s16 + $0x2e4] ss:$344 sps:$4 sm:$0xff]   ;;  %v5033_v47 = vld [vmem:[%s5764_s16 + $0x34] ss:$344 sps:$4 sm:$0xff]  }
  0xb3   : > { %2064 = vmatpush1.bf16.msra.mxu0 %v4995_v19  ;;  %v5030_v44 = vld [vmem:[%s5764_s16 + $0x2ec] ss:$344 sps:$4 sm:$0xff]   ;;  %v5025_v45 = vld [vmem:[%s5764_s16 + $0x2e0] ss:$344 sps:$4 sm:$0xff]   ;;  %v5036_v48 = vld [vmem:[%s5764_s16 + $0x3c] ss:$344 sps:$4 sm:$0xff]  }
  0xb4   : > { %2143 = vmatprep.subr.bf16.mxu0 %v5003_v21  ;;  %v5028_v46 = vld [vmem:[%s5764_s16 + $0x2e8] ss:$344 sps:$4 sm:$0xff]   ;;  %v5034_v50 = vld [vmem:[%s5764_s16 + $0x38] ss:$344 sps:$4 sm:$0xff]   ;;  %v5039_v51 = vld [vmem:[%s5764_s16 + $0x2f4] ss:$344 sps:$4 sm:$0xff]  }
  0xb5   : > { %v5031_v49 = vld [vmem:[%s5764_s16 + $0x30] ss:$344 sps:$4 sm:$0xff]   ;;  %v5042_v52 = vld [vmem:[%s5764_s16 + $0x2fc] ss:$344 sps:$4 sm:$0xff]   ;;  %v5048_v56 = vld [vmem:[%s5764_s16 + $0x4c] ss:$344 sps:$4 sm:$0xff]  }
  0xb6   : > { %v5037_v53 = vld [vmem:[%s5764_s16 + $0x2f0] ss:$344 sps:$4 sm:$0xff]   ;;  %v5045_v55 = vld [vmem:[%s5764_s16 + $0x44] ss:$344 sps:$4 sm:$0xff]   ;;  %v5043_v57 = vld [vmem:[%s5764_s16 + $0x40] ss:$344 sps:$4 sm:$0xff]  }
  0xb7   : > { %v5040_v54 = vld [vmem:[%s5764_s16 + $0x2f8] ss:$344 sps:$4 sm:$0xff]   ;;  %v5046_v58 = vld [vmem:[%s5764_s16 + $0x48] ss:$344 sps:$4 sm:$0xff]   ;;  %v5051_v59 = vld [vmem:[%s5764_s16 + $0x304] ss:$344 sps:$4 sm:$0xff]  }
  0xb8   : > { %v5054_v60 = vld [vmem:[%s5764_s16 + $0x30c] ss:$344 sps:$4 sm:$0xff]   ;;  %v5049_v61 = vld [vmem:[%s5764_s16 + $0x300] ss:$344 sps:$4 sm:$0xff]   ;;  %v5060_v0 = vld [vmem:[%s5764_s16 + $0x5c] ss:$344 sps:$4 sm:$0xff]  }
  0xb9   : > { %v5052_v62 = vld [vmem:[%s5764_s16 + $0x308] ss:$344 sps:$4 sm:$0xff]   ;;  %v5057_v63 = vld [vmem:[%s5764_s16 + $0x54] ss:$344 sps:$4 sm:$0xff]   ;;  %v5058_v2 = vld [vmem:[%s5764_s16 + $0x58] ss:$344 sps:$4 sm:$0xff]  }
  0xba   : > { %v5055_v1 = vld [vmem:[%s5764_s16 + $0x50] ss:$344 sps:$4 sm:$0xff]   ;;  %v5063_v3 = vld [vmem:[%s5764_s16 + $0x314] ss:$344 sps:$4 sm:$0xff]   ;;  %v5069_v7 = vld [vmem:[%s5764_s16 + $0x64] ss:$344 sps:$4 sm:$0xff]  }
  0xbb   : > { %v5066_v4 = vld [vmem:[%s5764_s16 + $0x31c] ss:$344 sps:$4 sm:$0xff]   ;;  %v5061_v5 = vld [vmem:[%s5764_s16 + $0x310] ss:$344 sps:$4 sm:$0xff]   ;;  %v5072_v8 = vld [vmem:[%s5764_s16 + $0x6c] ss:$344 sps:$4 sm:$0xff]  }
  0xbc   : > { %v5064_v6 = vld [vmem:[%s5764_s16 + $0x318] ss:$344 sps:$4 sm:$0xff]   ;;  %v5070_v10 = vld [vmem:[%s5764_s16 + $0x68] ss:$344 sps:$4 sm:$0xff]   ;;  %v5087_v19 = vld [vmem:[%s5764_s16 + $0x334] ss:$344 sps:$4 sm:$0xff]  }
  0xbd   : > { %v5067_v9 = vld [vmem:[%s5764_s16 + $0x60] ss:$344 sps:$4 sm:$0xff]   ;;  %v5079_v17 = vld [vmem:[%s5764_s16 + $0x70] ss:$344 sps:$4 sm:$0xff]   ;;  %s6086_s15 = scalar_lea.vmem [#allocation13], %s4877_s30  ;;  %s6120_s18 = scalar_lea.vmem [#allocation14], %s4877_s30 }
  0xbe   : > { %v5085_v21 = vld [vmem:[%s5764_s16 + $0x330] ss:$344 sps:$4 sm:$0xff]   ;;  %s4847_s14 = smul.u32 1376, %s5589_s28  ;;  %s4469_s21 = sshll.u32 %s6120_s18, 4  ;;  %s4470_s21 = int_to_ptr.vmem [resolvable:$true] %s4469_s21 }
  0xbf   : > { %s5433_s22 = scalar_lea.vmem %s4470_s21, 1376  ;;  %p6355_p13 = scmp.ne.s32.totalorder %s6339_s13, 0 }
  0xc0   : > { %s4467_s5 = scalar_lea.hbm %s6319_s7, %s4847_s14  ;;  %p5434_p3 = scmp.ne.s32.totalorder %s4470_s21, %s5433_s22 }
  0xc1   : > { %s5527_s28 = smov [#allocation14]  }
  0xc2   : > { %p5435_p5 = pnand %p5434_p3, %p6355_p13  ;;  %s5437_s10 = sshll.u32 %s5527_s28, 4  ;;  %s5438_s10 = int_to_ptr.vmem [resolvable:$false] %s5437_s10 }
  0xc3   : > { %s5439_s19 = scalar_lea.vmem %s5438_s10, 2752  ;;  %p5440_p2 = scmp.lt.s32.totalorder %s4470_s21, %s5438_s10 }
  0xc4   : > { %p5436_p12 = pneg %p5435_p5  ;;  %p5441_p1 = scmp.lt.s32.totalorder %s5439_s19, %s5433_s22 }
  0xc6   : > { %p5442_p8 = por %p5441_p1, %p5440_p2 }
  0xc8   : > { %p5443_p7 = pnand %p5442_p8, %p5436_p12 }
 0x16d   : > { %v477_v12 = vpop.f32.mrf.mxu0 }
 0x16e   : > { %v478_v13 = vadd.f32 %v477_v12, %v406_v11  ;;  %v5075_v11 = vld [vmem:[%s5764_s16 + $0x324] ss:$344 sps:$4 sm:$0xff]  }
 0x16f   : > { %v4862_v14 = vpop.f32.mrf.mxu0  ;;  %v5078_v12 = vld [vmem:[%s5764_s16 + $0x32c] ss:$344 sps:$4 sm:$0xff]  }
 0x170   : > { %v481_v16 = vmax.f32 %v478_v13, 0.0  ;;  %v5073_v13 = vld [vmem:[%s5764_s16 + $0x320] ss:$344 sps:$4 sm:$0xff]  }
 0x171   : > { %v5076_v14 = vld [vmem:[%s5764_s16 + $0x328] ss:$344 sps:$4 sm:$0xff]  }
 0x172   : > { %4872 = vmatmul.mubr.msk.f32.vlgmr.msra.gmra.mxu1 %vm487_vm2, %v481_v16  ;;  %v5084_v16 = vld [vmem:[%s5764_s16 + $0x7c] ss:$344 sps:$4 sm:$0xff]  }
 0x173   : > { %2103 = vmatpush1.bf16.msra.mxu1 %v4992_v15  ;;  %2122 = vmatprep.mubr.bf16.mxu1 %v5525_v22  ;;  %v5081_v15 = vld [vmem:[%s5764_s16 + $0x74] ss:$344 sps:$4 sm:$0xff]  }
 0x174   : > { %2104 = vmatprep.subr.bf16.mxu1 %v5000_v18  ;;  %v5082_v18 = vld [vmem:[%s5764_s16 + $0x78] ss:$344 sps:$4 sm:$0xff]  }
 0x177   : > { %2105 = vmatpush1.bf16.msra.mxu1 %v4998_v20  ;;  %v5090_v20 = vld [vmem:[%s5764_s16 + $0x33c] ss:$344 sps:$4 sm:$0xff]  }
 0x178   : > { %2184 = vmatprep.subr.bf16.mxu1 %v5006_v23  ;;  %v5088_v23 = vld [vmem:[%s5764_s16 + $0x338] ss:$344 sps:$4 sm:$0xff]  }
 0x232   : > { %v557_v25 = vpop.f32.mrf.mxu1 }
 0x233   : > { %v558_v26 = vadd.f32 %v557_v25, %v486_v24  ;;  %v5093_v24 = vld [vmem:[%s5764_s16 + $0x84] ss:$344 sps:$4 sm:$0xff]  }
 0x234   : > { %v4873_v27 = vpop.f32.mrf.mxu1  ;;  %v5096_v25 = vld [vmem:[%s5764_s16 + $0x8c] ss:$344 sps:$4 sm:$0xff]  }
 0x235   : > { %v5785_v30 = vpack.c.bf16 %v558_v26, %v558_v26  ;;  %v5091_v26 = vld [vmem:[%s5764_s16 + $0x80] ss:$344 sps:$4 sm:$0xff]  }
 0x236   : > { %v5094_v27 = vld [vmem:[%s5764_s16 + $0x88] ss:$344 sps:$4 sm:$0xff]  }
 0x237   : > { %4799 = vmatmul.mubr.msk.bf16.vlgmr.msra.gmra.mxu0 %vm487_vm2, %v5785_v30  ;;  %4800 = vmatmul.mubr.msk.bf16.vlgmr.msra.gmra.mxu1 %vm487_vm2, %v5785_v30 }
 0x238   : > { %2144 = vmatpush1.bf16.msra.mxu0 %v5001_v28  ;;  %2185 = vmatpush1.bf16.msra.mxu1 %v5004_v29  ;;  %v5099_v28 = vld [vmem:[%s5764_s16 + $0x344] ss:$344 sps:$4 sm:$0xff]  }
 0x239   : > { %2145 = vmatprep.subr.bf16.mxu0 %v5009_v31  ;;  %2186 = vmatprep.subr.bf16.mxu1 %v5012_v32  ;;  %v5102_v29 = vld [vmem:[%s5764_s16 + $0x34c] ss:$344 sps:$4 sm:$0xff]   ;;  %v5097_v31 = vld [vmem:[%s5764_s16 + $0x340] ss:$344 sps:$4 sm:$0xff]  }
 0x23a   : > { %2163 = vmatprep.mubr.bf16.mxu0 %v5525_v22  ;;  %2204 = vmatprep.mubr.bf16.mxu1 %v5525_v22  ;;  %v5100_v32 = vld [vmem:[%s5764_s16 + $0x348] ss:$344 sps:$4 sm:$0xff]  }
 0x23c   : > { %2146 = vmatpush1.bf16.msra.mxu0 %v5007_v33  ;;  %2187 = vmatpush1.bf16.msra.mxu1 %v5010_v34  ;;  %v5105_v33 = vld [vmem:[%s5764_s16 + $0x94] ss:$344 sps:$4 sm:$0xff]  }
 0x23d   : > { %2225 = vmatprep.subr.bf16.mxu0 %v5015_v35  ;;  %2266 = vmatprep.subr.bf16.mxu1 %v5018_v36  ;;  %v5108_v34 = vld [vmem:[%s5764_s16 + $0x9c] ss:$344 sps:$4 sm:$0xff]   ;;  %v5103_v35 = vld [vmem:[%s5764_s16 + $0x90] ss:$344 sps:$4 sm:$0xff]  }
 0x23e   : > { %v5106_v36 = vld [vmem:[%s5764_s16 + $0x98] ss:$344 sps:$4 sm:$0xff]  }
 0x23f   : > { %4801 = vmatmul.mubr.msk.bf16.vlgmr.msra.gmra.mxu0 %vm487_vm2, %v5785_v30  ;;  %4802 = vmatmul.mubr.msk.bf16.vlgmr.msra.gmra.mxu1 %vm487_vm2, %v5785_v30 }
 0x240   : > { %2226 = vmatpush1.bf16.msra.mxu0 %v5013_v37  ;;  %2267 = vmatpush1.bf16.msra.mxu1 %v5016_v38  ;;  %v5111_v37 = vld [vmem:[%s5764_s16 + $0x354] ss:$344 sps:$4 sm:$0xff]  }
 0x241   : > { %2227 = vmatprep.subr.bf16.mxu0 %v5021_v39  ;;  %2268 = vmatprep.subr.bf16.mxu1 %v5024_v40  ;;  %v5114_v38 = vld [vmem:[%s5764_s16 + $0x35c] ss:$344 sps:$4 sm:$0xff]   ;;  %v5109_v39 = vld [vmem:[%s5764_s16 + $0x350] ss:$344 sps:$4 sm:$0xff]  }
 0x242   : > { %2245 = vmatprep.mubr.bf16.mxu0 %v5525_v22  ;;  %2286 = vmatprep.mubr.bf16.mxu1 %v5525_v22  ;;  %v5112_v40 = vld [vmem:[%s5764_s16 + $0x358] ss:$344 sps:$4 sm:$0xff]  }
 0x244   : > { %2228 = vmatpush1.bf16.msra.mxu0 %v5019_v41  ;;  %2269 = vmatpush1.bf16.msra.mxu1 %v5022_v42  ;;  %v5117_v41 = vld [vmem:[%s5764_s16 + $0xa4] ss:$344 sps:$4 sm:$0xff]  }
 0x245   : > { %2307 = vmatprep.subr.bf16.mxu0 %v5027_v43  ;;  %2348 = vmatprep.subr.bf16.mxu1 %v5030_v44  ;;  %v5120_v42 = vld [vmem:[%s5764_s16 + $0xac] ss:$344 sps:$4 sm:$0xff]   ;;  %v5115_v43 = vld [vmem:[%s5764_s16 + $0xa0] ss:$344 sps:$4 sm:$0xff]  }
 0x246   : > { %v5118_v44 = vld [vmem:[%s5764_s16 + $0xa8] ss:$344 sps:$4 sm:$0xff]  }
 0x247   : > { %4803 = vmatmul.mubr.msk.bf16.vlgmr.msra.gmra.mxu0 %vm487_vm2, %v5785_v30  ;;  %4804 = vmatmul.mubr.msk.bf16.vlgmr.msra.gmra.mxu1 %vm487_vm2, %v5785_v30 }
 0x248   : > { %2308 = vmatpush1.bf16.msra.mxu0 %v5025_v45  ;;  %2349 = vmatpush1.bf16.msra.mxu1 %v5028_v46  ;;  %v5123_v45 = vld [vmem:[%s5764_s16 + $0x364] ss:$344 sps:$4 sm:$0xff]  }
 0x249   : > { %2309 = vmatprep.subr.bf16.mxu0 %v5033_v47  ;;  %2350 = vmatprep.subr.bf16.mxu1 %v5036_v48  ;;  %v5126_v46 = vld [vmem:[%s5764_s16 + $0x36c] ss:$344 sps:$4 sm:$0xff]   ;;  %v5121_v47 = vld [vmem:[%s5764_s16 + $0x360] ss:$344 sps:$4 sm:$0xff]  }
 0x24a   : > { %2327 = vmatprep.mubr.bf16.mxu0 %v5525_v22  ;;  %2368 = vmatprep.mubr.bf16.mxu1 %v5525_v22  ;;  %v5124_v48 = vld [vmem:[%s5764_s16 + $0x368] ss:$344 sps:$4 sm:$0xff]  }
 0x24c   : > { %2310 = vmatpush1.bf16.msra.mxu0 %v5031_v49  ;;  %2351 = vmatpush1.bf16.msra.mxu1 %v5034_v50  ;;  %v5129_v49 = vld [vmem:[%s5764_s16 + $0xb4] ss:$344 sps:$4 sm:$0xff]  }
 0x24d   : > { %2389 = vmatprep.subr.bf16.mxu0 %v5039_v51  ;;  %2430 = vmatprep.subr.bf16.mxu1 %v5042_v52  ;;  %v5132_v50 = vld [vmem:[%s5764_s16 + $0xbc] ss:$344 sps:$4 sm:$0xff]   ;;  %v5127_v51 = vld [vmem:[%s5764_s16 + $0xb0] ss:$344 sps:$4 sm:$0xff]  }
 0x24e   : > { %v5130_v52 = vld [vmem:[%s5764_s16 + $0xb8] ss:$344 sps:$4 sm:$0xff]  }
 0x24f   : > { %4805 = vmatmul.mubr.msk.bf16.vlgmr.msra.gmra.mxu0 %vm487_vm2, %v5785_v30  ;;  %4806 = vmatmul.mubr.msk.bf16.vlgmr.msra.gmra.mxu1 %vm487_vm2, %v5785_v30 }
 0x250   : > { %2390 = vmatpush1.bf16.msra.mxu0 %v5037_v53  ;;  %2431 = vmatpush1.bf16.msra.mxu1 %v5040_v54  ;;  %v5135_v53 = vld [vmem:[%s5764_s16 + $0x374] ss:$344 sps:$4 sm:$0xff]  }
 0x251   : > { %2391 = vmatprep.subr.bf16.mxu0 %v5045_v55  ;;  %2432 = vmatprep.subr.bf16.mxu1 %v5048_v56  ;;  %v5138_v54 = vld [vmem:[%s5764_s16 + $0x37c] ss:$344 sps:$4 sm:$0xff]   ;;  %v5133_v55 = vld [vmem:[%s5764_s16 + $0x370] ss:$344 sps:$4 sm:$0xff]  }
 0x252   : > { %2409 = vmatprep.mubr.bf16.mxu0 %v5525_v22  ;;  %2450 = vmatprep.mubr.bf16.mxu1 %v5525_v22  ;;  %v5136_v56 = vld [vmem:[%s5764_s16 + $0x378] ss:$344 sps:$4 sm:$0xff]  }
 0x254   : > { %2392 = vmatpush1.bf16.msra.mxu0 %v5043_v57  ;;  %2433 = vmatpush1.bf16.msra.mxu1 %v5046_v58  ;;  %v5141_v57 = vld [vmem:[%s5764_s16 + $0xc4] ss:$344 sps:$4 sm:$0xff]  }
 0x255   : > { %2471 = vmatprep.subr.bf16.mxu0 %v5051_v59  ;;  %2512 = vmatprep.subr.bf16.mxu1 %v5054_v60  ;;  %v5144_v58 = vld [vmem:[%s5764_s16 + $0xcc] ss:$344 sps:$4 sm:$0xff]   ;;  %v5139_v59 = vld [vmem:[%s5764_s16 + $0xc0] ss:$344 sps:$4 sm:$0xff]  }
 0x256   : > { %v5142_v60 = vld [vmem:[%s5764_s16 + $0xc8] ss:$344 sps:$4 sm:$0xff]  }
 0x257   : > { %4807 = vmatmul.mubr.msk.bf16.vlgmr.msra.gmra.mxu0 %vm487_vm2, %v5785_v30  ;;  %4808 = vmatmul.mubr.msk.bf16.vlgmr.msra.gmra.mxu1 %vm487_vm2, %v5785_v30 }
 0x258   : > { %2472 = vmatpush1.bf16.msra.mxu0 %v5049_v61  ;;  %2513 = vmatpush1.bf16.msra.mxu1 %v5052_v62  ;;  %v5147_v61 = vld [vmem:[%s5764_s16 + $0x384] ss:$344 sps:$4 sm:$0xff]  }
 0x259   : > { %2473 = vmatprep.subr.bf16.mxu0 %v5057_v63  ;;  %2514 = vmatprep.subr.bf16.mxu1 %v5060_v0  ;;  %v5150_v62 = vld [vmem:[%s5764_s16 + $0x38c] ss:$344 sps:$4 sm:$0xff]   ;;  %v5145_v63 = vld [vmem:[%s5764_s16 + $0x380] ss:$344 sps:$4 sm:$0xff]  }
 0x25a   : > { %2491 = vmatprep.mubr.bf16.mxu0 %v5525_v22  ;;  %2532 = vmatprep.mubr.bf16.mxu1 %v5525_v22  ;;  %v5148_v0 = vld [vmem:[%s5764_s16 + $0x388] ss:$344 sps:$4 sm:$0xff]  }
 0x25c   : > { %2474 = vmatpush1.bf16.msra.mxu0 %v5055_v1  ;;  %2515 = vmatpush1.bf16.msra.mxu1 %v5058_v2  ;;  %v5153_v1 = vld [vmem:[%s5764_s16 + $0xd4] ss:$344 sps:$4 sm:$0xff]  }
 0x25d   : > { %2553 = vmatprep.subr.bf16.mxu0 %v5063_v3  ;;  %2594 = vmatprep.subr.bf16.mxu1 %v5066_v4  ;;  %v5156_v2 = vld [vmem:[%s5764_s16 + $0xdc] ss:$344 sps:$4 sm:$0xff]   ;;  %v5151_v3 = vld [vmem:[%s5764_s16 + $0xd0] ss:$344 sps:$4 sm:$0xff]  }
 0x25e   : > { %v5154_v4 = vld [vmem:[%s5764_s16 + $0xd8] ss:$344 sps:$4 sm:$0xff]  }
 0x25f   : > { %4809 = vmatmul.mubr.msk.bf16.vlgmr.msra.gmra.mxu0 %vm487_vm2, %v5785_v30  ;;  %4810 = vmatmul.mubr.msk.bf16.vlgmr.msra.gmra.mxu1 %vm487_vm2, %v5785_v30 }
 0x260   : > { %2554 = vmatpush1.bf16.msra.mxu0 %v5061_v5  ;;  %2595 = vmatpush1.bf16.msra.mxu1 %v5064_v6  ;;  %v5159_v5 = vld [vmem:[%s5764_s16 + $0x394] ss:$344 sps:$4 sm:$0xff]  }
 0x261   : > { %2555 = vmatprep.subr.bf16.mxu0 %v5069_v7  ;;  %2596 = vmatprep.subr.bf16.mxu1 %v5072_v8  ;;  %v5162_v6 = vld [vmem:[%s5764_s16 + $0x39c] ss:$344 sps:$4 sm:$0xff]   ;;  %v5157_v7 = vld [vmem:[%s5764_s16 + $0x390] ss:$344 sps:$4 sm:$0xff]  }
 0x262   : > { %2573 = vmatprep.mubr.bf16.mxu0 %v5525_v22  ;;  %2614 = vmatprep.mubr.bf16.mxu1 %v5525_v22  ;;  %v5160_v8 = vld [vmem:[%s5764_s16 + $0x398] ss:$344 sps:$4 sm:$0xff]  }
 0x264   : > { %2556 = vmatpush1.bf16.msra.mxu0 %v5067_v9  ;;  %2597 = vmatpush1.bf16.msra.mxu1 %v5070_v10  ;;  %v5165_v9 = vld [vmem:[%s5764_s16 + $0xe4] ss:$344 sps:$4 sm:$0xff]  }
 0x265   : > { %2635 = vmatprep.subr.bf16.mxu0 %v5075_v11  ;;  %2676 = vmatprep.subr.bf16.mxu1 %v5078_v12  ;;  %v5168_v10 = vld [vmem:[%s5764_s16 + $0xec] ss:$344 sps:$4 sm:$0xff]   ;;  %v5163_v11 = vld [vmem:[%s5764_s16 + $0xe0] ss:$344 sps:$4 sm:$0xff]  }
 0x266   : > { %v5166_v12 = vld [vmem:[%s5764_s16 + $0xe8] ss:$344 sps:$4 sm:$0xff]  }
 0x267   : > { %4811 = vmatmul.mubr.msk.bf16.vlgmr.msra.gmra.mxu0 %vm487_vm2, %v5785_v30  ;;  %4812 = vmatmul.mubr.msk.bf16.vlgmr.msra.gmra.mxu1 %vm487_vm2, %v5785_v30 }
 0x268   : > { %2636 = vmatpush1.bf16.msra.mxu0 %v5073_v13  ;;  %2677 = vmatpush1.bf16.msra.mxu1 %v5076_v14  ;;  %v5171_v13 = vld [vmem:[%s5764_s16 + $0x3a4] ss:$344 sps:$4 sm:$0xff]  }
 0x269   : > { %2637 = vmatprep.subr.bf16.mxu0 %v5081_v15  ;;  %2678 = vmatprep.subr.bf16.mxu1 %v5084_v16  ;;  %v5174_v14 = vld [vmem:[%s5764_s16 + $0x3ac] ss:$344 sps:$4 sm:$0xff]   ;;  %v5169_v15 = vld [vmem:[%s5764_s16 + $0x3a0] ss:$344 sps:$4 sm:$0xff]  }
 0x26a   : > { %2655 = vmatprep.mubr.bf16.mxu0 %v5525_v22  ;;  %2696 = vmatprep.mubr.bf16.mxu1 %v5525_v22  ;;  %v5172_v16 = vld [vmem:[%s5764_s16 + $0x3a8] ss:$344 sps:$4 sm:$0xff]  }
 0x26c   : > { %2638 = vmatpush1.bf16.msra.mxu0 %v5079_v17  ;;  %2679 = vmatpush1.bf16.msra.mxu1 %v5082_v18  ;;  %v5177_v17 = vld [vmem:[%s5764_s16 + $0xf4] ss:$344 sps:$4 sm:$0xff]  }
 0x26d   : > { %2717 = vmatprep.subr.bf16.mxu0 %v5087_v19  ;;  %2758 = vmatprep.subr.bf16.mxu1 %v5090_v20  ;;  %v5180_v18 = vld [vmem:[%s5764_s16 + $0xfc] ss:$344 sps:$4 sm:$0xff]   ;;  %v5175_v19 = vld [vmem:[%s5764_s16 + $0xf0] ss:$344 sps:$4 sm:$0xff]  }
 0x26e   : > { %v5178_v20 = vld [vmem:[%s5764_s16 + $0xf8] ss:$344 sps:$4 sm:$0xff]  }
 0x26f   : > { %4813 = vmatmul.mubr.msk.bf16.vlgmr.msra.gmra.mxu0 %vm487_vm2, %v5785_v30  ;;  %4814 = vmatmul.mubr.msk.bf16.vlgmr.msra.gmra.mxu1 %vm487_vm2, %v5785_v30 }
 0x270   : > { %2718 = vmatpush1.bf16.msra.mxu0 %v5085_v21  ;;  %2759 = vmatpush1.bf16.msra.mxu1 %v5088_v23  ;;  %v5183_v21 = vld [vmem:[%s5764_s16 + $0x3b4] ss:$344 sps:$4 sm:$0xff]  }
 0x271   : > { %2719 = vmatprep.subr.bf16.mxu0 %v5093_v24  ;;  %2760 = vmatprep.subr.bf16.mxu1 %v5096_v25  ;;  %v5186_v23 = vld [vmem:[%s5764_s16 + $0x3bc] ss:$344 sps:$4 sm:$0xff]   ;;  %v5181_v24 = vld [vmem:[%s5764_s16 + $0x3b0] ss:$344 sps:$4 sm:$0xff]  }
 0x272   : > { %2737 = vmatprep.mubr.bf16.mxu0 %v5525_v22  ;;  %2778 = vmatprep.mubr.bf16.mxu1 %v5525_v22  ;;  %v5184_v25 = vld [vmem:[%s5764_s16 + $0x3b8] ss:$344 sps:$4 sm:$0xff]  }
 0x274   : > { %2720 = vmatpush1.bf16.msra.mxu0 %v5091_v26  ;;  %2761 = vmatpush1.bf16.msra.mxu1 %v5094_v27  ;;  %v5189_v26 = vld [vmem:[%s5764_s16 + $0x104] ss:$344 sps:$4 sm:$0xff]  }
 0x275   : > { %2799 = vmatprep.subr.bf16.mxu0 %v5099_v28  ;;  %2840 = vmatprep.subr.bf16.mxu1 %v5102_v29  ;;  %v5192_v27 = vld [vmem:[%s5764_s16 + $0x10c] ss:$344 sps:$4 sm:$0xff]   ;;  %v5187_v28 = vld [vmem:[%s5764_s16 + $0x100] ss:$344 sps:$4 sm:$0xff]  }
 0x276   : > { %v5190_v29 = vld [vmem:[%s5764_s16 + $0x108] ss:$344 sps:$4 sm:$0xff]  }
 0x277   : > { %4815 = vmatmul.mubr.msk.bf16.vlgmr.msra.gmra.mxu0 %vm487_vm2, %v5785_v30  ;;  %4816 = vmatmul.mubr.msk.bf16.vlgmr.msra.gmra.mxu1 %vm487_vm2, %v5785_v30 }
 0x278   : > { %2800 = vmatpush1.bf16.msra.mxu0 %v5097_v31  ;;  %2841 = vmatpush1.bf16.msra.mxu1 %v5100_v32  ;;  %v5195_v31 = vld [vmem:[%s5764_s16 + $0x3c4] ss:$344 sps:$4 sm:$0xff]  }
 0x279   : > { %2801 = vmatprep.subr.bf16.mxu0 %v5105_v33  ;;  %2842 = vmatprep.subr.bf16.mxu1 %v5108_v34  ;;  %v5198_v32 = vld [vmem:[%s5764_s16 + $0x3cc] ss:$344 sps:$4 sm:$0xff]   ;;  %v5193_v33 = vld [vmem:[%s5764_s16 + $0x3c0] ss:$344 sps:$4 sm:$0xff]  }
 0x27a   : > { %2819 = vmatprep.mubr.bf16.mxu0 %v5525_v22  ;;  %2860 = vmatprep.mubr.bf16.mxu1 %v5525_v22  ;;  %v5196_v34 = vld [vmem:[%s5764_s16 + $0x3c8] ss:$344 sps:$4 sm:$0xff]  }
 0x27c   : > { %2802 = vmatpush1.bf16.msra.mxu0 %v5103_v35  ;;  %2843 = vmatpush1.bf16.msra.mxu1 %v5106_v36  ;;  %v5201_v35 = vld [vmem:[%s5764_s16 + $0x114] ss:$344 sps:$4 sm:$0xff]  }
 0x27d   : > { %2881 = vmatprep.subr.bf16.mxu0 %v5111_v37  ;;  %2922 = vmatprep.subr.bf16.mxu1 %v5114_v38  ;;  %v5204_v36 = vld [vmem:[%s5764_s16 + $0x11c] ss:$344 sps:$4 sm:$0xff]   ;;  %v5199_v37 = vld [vmem:[%s5764_s16 + $0x110] ss:$344 sps:$4 sm:$0xff]  }
 0x27e   : > { %v5202_v38 = vld [vmem:[%s5764_s16 + $0x118] ss:$344 sps:$4 sm:$0xff]  }
 0x27f   : > { %4817 = vmatmul.mubr.msk.bf16.vlgmr.msra.gmra.mxu0 %vm487_vm2, %v5785_v30  ;;  %4818 = vmatmul.mubr.msk.bf16.vlgmr.msra.gmra.mxu1 %vm487_vm2, %v5785_v30 }
 0x280   : > { %2882 = vmatpush1.bf16.msra.mxu0 %v5109_v39  ;;  %2923 = vmatpush1.bf16.msra.mxu1 %v5112_v40  ;;  %v5207_v39 = vld [vmem:[%s5764_s16 + $0x3d4] ss:$344 sps:$4 sm:$0xff]  }
 0x281   : > { %2883 = vmatprep.subr.bf16.mxu0 %v5117_v41  ;;  %2924 = vmatprep.subr.bf16.mxu1 %v5120_v42  ;;  %v5210_v40 = vld [vmem:[%s5764_s16 + $0x3dc] ss:$344 sps:$4 sm:$0xff]   ;;  %v5205_v41 = vld [vmem:[%s5764_s16 + $0x3d0] ss:$344 sps:$4 sm:$0xff]  }
 0x282   : > { %2901 = vmatprep.mubr.bf16.mxu0 %v5525_v22  ;;  %2942 = vmatprep.mubr.bf16.mxu1 %v5525_v22  ;;  %v5208_v42 = vld [vmem:[%s5764_s16 + $0x3d8] ss:$344 sps:$4 sm:$0xff]  }
 0x284   : > { %2884 = vmatpush1.bf16.msra.mxu0 %v5115_v43  ;;  %2925 = vmatpush1.bf16.msra.mxu1 %v5118_v44  ;;  %v5213_v43 = vld [vmem:[%s5764_s16 + $0x124] ss:$344 sps:$4 sm:$0xff]  }
 0x285   : > { %2963 = vmatprep.subr.bf16.mxu0 %v5123_v45  ;;  %3004 = vmatprep.subr.bf16.mxu1 %v5126_v46  ;;  %v5216_v44 = vld [vmem:[%s5764_s16 + $0x12c] ss:$344 sps:$4 sm:$0xff]   ;;  %v5211_v45 = vld [vmem:[%s5764_s16 + $0x120] ss:$344 sps:$4 sm:$0xff]  }
 0x286   : > { %v5214_v46 = vld [vmem:[%s5764_s16 + $0x128] ss:$344 sps:$4 sm:$0xff]  }
 0x287   : > { %4819 = vmatmul.mubr.msk.bf16.vlgmr.msra.gmra.mxu0 %vm487_vm2, %v5785_v30  ;;  %4820 = vmatmul.mubr.msk.bf16.vlgmr.msra.gmra.mxu1 %vm487_vm2, %v5785_v30 }
 0x288   : > { %2964 = vmatpush1.bf16.msra.mxu0 %v5121_v47  ;;  %3005 = vmatpush1.bf16.msra.mxu1 %v5124_v48  ;;  %v5219_v47 = vld [vmem:[%s5764_s16 + $0x3e4] ss:$344 sps:$4 sm:$0xff]  }
 0x289   : > { %2965 = vmatprep.subr.bf16.mxu0 %v5129_v49  ;;  %3006 = vmatprep.subr.bf16.mxu1 %v5132_v50  ;;  %v5222_v48 = vld [vmem:[%s5764_s16 + $0x3ec] ss:$344 sps:$4 sm:$0xff]   ;;  %v5217_v49 = vld [vmem:[%s5764_s16 + $0x3e0] ss:$344 sps:$4 sm:$0xff]  }
 0x28a   : > { %2983 = vmatprep.mubr.bf16.mxu0 %v5525_v22  ;;  %3024 = vmatprep.mubr.bf16.mxu1 %v5525_v22  ;;  %v5220_v50 = vld [vmem:[%s5764_s16 + $0x3e8] ss:$344 sps:$4 sm:$0xff]  }
 0x28c   : > { %2966 = vmatpush1.bf16.msra.mxu0 %v5127_v51  ;;  %3007 = vmatpush1.bf16.msra.mxu1 %v5130_v52  ;;  %v5225_v51 = vld [vmem:[%s5764_s16 + $0x134] ss:$344 sps:$4 sm:$0xff]  }
 0x28d   : > { %3045 = vmatprep.subr.bf16.mxu0 %v5135_v53  ;;  %3086 = vmatprep.subr.bf16.mxu1 %v5138_v54  ;;  %v5228_v52 = vld [vmem:[%s5764_s16 + $0x13c] ss:$344 sps:$4 sm:$0xff]   ;;  %v5223_v53 = vld [vmem:[%s5764_s16 + $0x130] ss:$344 sps:$4 sm:$0xff]  }
 0x28e   : > { %v5226_v54 = vld [vmem:[%s5764_s16 + $0x138] ss:$344 sps:$4 sm:$0xff]  }
 0x28f   : > { %4821 = vmatmul.mubr.msk.bf16.vlgmr.msra.gmra.mxu0 %vm487_vm2, %v5785_v30  ;;  %4822 = vmatmul.mubr.msk.bf16.vlgmr.msra.gmra.mxu1 %vm487_vm2, %v5785_v30 }
 0x290   : > { %3046 = vmatpush1.bf16.msra.mxu0 %v5133_v55  ;;  %3087 = vmatpush1.bf16.msra.mxu1 %v5136_v56  ;;  %v5231_v55 = vld [vmem:[%s5764_s16 + $0x3f4] ss:$344 sps:$4 sm:$0xff]  }
 0x291   : > { %3047 = vmatprep.subr.bf16.mxu0 %v5141_v57  ;;  %3088 = vmatprep.subr.bf16.mxu1 %v5144_v58  ;;  %v5234_v56 = vld [vmem:[%s5764_s16 + $0x3fc] ss:$344 sps:$4 sm:$0xff]   ;;  %v5229_v57 = vld [vmem:[%s5764_s16 + $0x3f0] ss:$344 sps:$4 sm:$0xff]  }
 0x292   : > { %3065 = vmatprep.mubr.bf16.mxu0 %v5525_v22  ;;  %3106 = vmatprep.mubr.bf16.mxu1 %v5525_v22  ;;  %v5232_v58 = vld [vmem:[%s5764_s16 + $0x3f8] ss:$344 sps:$4 sm:$0xff]  }
 0x294   : > { %3048 = vmatpush1.bf16.msra.mxu0 %v5139_v59  ;;  %3089 = vmatpush1.bf16.msra.mxu1 %v5142_v60  ;;  %v5237_v59 = vld [vmem:[%s5764_s16 + $0x144] ss:$344 sps:$4 sm:$0xff]  }
 0x295   : > { %3127 = vmatprep.subr.bf16.mxu0 %v5147_v61  ;;  %3168 = vmatprep.subr.bf16.mxu1 %v5150_v62  ;;  %v5240_v60 = vld [vmem:[%s5764_s16 + $0x14c] ss:$344 sps:$4 sm:$0xff]   ;;  %v5235_v61 = vld [vmem:[%s5764_s16 + $0x140] ss:$344 sps:$4 sm:$0xff]  }
 0x296   : > { %v5238_v62 = vld [vmem:[%s5764_s16 + $0x148] ss:$344 sps:$4 sm:$0xff]  }
 0x297   : > { %4823 = vmatmul.mubr.msk.bf16.vlgmr.msra.gmra.mxu0 %vm487_vm2, %v5785_v30  ;;  %4824 = vmatmul.mubr.msk.bf16.vlgmr.msra.gmra.mxu1 %vm487_vm2, %v5785_v30 }
 0x298   : > { %3128 = vmatpush1.bf16.msra.mxu0 %v5145_v63  ;;  %3169 = vmatpush1.bf16.msra.mxu1 %v5148_v0  ;;  %v5243_v63 = vld [vmem:[%s5764_s16 + $0x404] ss:$344 sps:$4 sm:$0xff]   ;;  %v5241_v0 = vld [vmem:[%s5764_s16 + $0x400] ss:$344 sps:$4 sm:$0xff]  }
 0x299   : > { %3129 = vmatprep.subr.bf16.mxu0 %v5153_v1  ;;  %3170 = vmatprep.subr.bf16.mxu1 %v5156_v2  ;;  %v5246_v1 = vld [vmem:[%s5764_s16 + $0x154] ss:$344 sps:$4 sm:$0xff]   ;;  %v5244_v2 = vld [vmem:[%s5764_s16 + $0x150] ss:$344 sps:$4 sm:$0xff]  }
 0x29a   : > { %3147 = vmatprep.mubr.bf16.mxu0 %v5525_v22  ;;  %3188 = vmatprep.mubr.bf16.mxu1 %v5525_v22 }
 0x29c   : > { %3130 = vmatpush1.bf16.msra.mxu0 %v5151_v3  ;;  %3171 = vmatpush1.bf16.msra.mxu1 %v5154_v4  ;;  %v1616_v3 = vlaneseq }
 0x29d   : > { %3209 = vmatprep.subr.bf16.mxu0 %v5159_v5  ;;  %3250 = vmatprep.subr.bf16.mxu1 %v5162_v6 }
 0x29e   : > { %v1617_v4 = vshrl.u32 %v1616_v3, 7  ;;  %vm4451_vm3 = vcmp.lt.s32.totalorder %v1616_v3, 768 }
 0x29f   : > { %4825 = vmatmul.mubr.msk.bf16.vlgmr.msra.gmra.mxu0 %vm487_vm2, %v5785_v30  ;;  %4826 = vmatmul.mubr.msk.bf16.vlgmr.msra.gmra.mxu1 %vm487_vm2, %v5785_v30 }
 0x2a0   : > { %3210 = vmatpush1.bf16.msra.mxu0 %v5157_v7  ;;  %3251 = vmatpush1.bf16.msra.mxu1 %v5160_v8  ;;  %v6076_v5 = vsub.s32 1, %v1617_v4  ;;  %v6078_v6 = vsub.s32 3, %v1617_v4  ;;  %v6080_v7 = vsub.s32 0, %v1617_v4  ;;  %v6082_v8 = vsub.s32 2, %v1617_v4 }
 0x2a1   : > { %3211 = vmatprep.subr.bf16.mxu0 %v5165_v9  ;;  %3252 = vmatprep.subr.bf16.mxu1 %v5168_v10  ;;  %v5526_v9 = vmov 1966171168  }
 0x2a2   : > { %3229 = vmatprep.mubr.bf16.mxu0 %v5525_v22  ;;  %3270 = vmatprep.mubr.bf16.mxu1 %v5525_v22  ;;  %v3903_v10 = vunpack.c.l.s4 %v5526_v9 }
 0x2a4   : > { %3212 = vmatpush1.bf16.msra.mxu0 %v5163_v11  ;;  %3253 = vmatpush1.bf16.msra.mxu1 %v5166_v12 }
 0x2a5   : > { %3291 = vmatprep.subr.bf16.mxu0 %v5171_v13  ;;  %3332 = vmatprep.subr.bf16.mxu1 %v5174_v14 }
 0x2a7   : > { %4827 = vmatmul.mubr.msk.bf16.vlgmr.msra.gmra.mxu0 %vm487_vm2, %v5785_v30  ;;  %4828 = vmatmul.mubr.msk.bf16.vlgmr.msra.gmra.mxu1 %vm487_vm2, %v5785_v30 }
 0x2a8   : > { %3292 = vmatpush1.bf16.msra.mxu0 %v5169_v15  ;;  %3333 = vmatpush1.bf16.msra.mxu1 %v5172_v16 }
 0x2a9   : > { %3293 = vmatprep.subr.bf16.mxu0 %v5177_v17  ;;  %3334 = vmatprep.subr.bf16.mxu1 %v5180_v18  ;;  %v3904_v17 = vunpack.c.0.s8 %v3903_v10 }
 0x2aa   : > { %3311 = vmatprep.mubr.bf16.mxu0 %v5525_v22  ;;  %3352 = vmatprep.mubr.bf16.mxu1 %v5525_v22 }
 0x2ac   : > { %3294 = vmatpush1.bf16.msra.mxu0 %v5175_v19  ;;  %3335 = vmatpush1.bf16.msra.mxu1 %v5178_v20  ;;  %v6093_v19 = vsub.s32 4, %v1617_v4  ;;  %v6095_v20 = vsub.s32 6, %v1617_v4 }
 0x2ad   : > { %3373 = vmatprep.subr.bf16.mxu0 %v5183_v21  ;;  %3414 = vmatprep.subr.bf16.mxu1 %v5186_v23 }
 0x2af   : > { %4829 = vmatmul.mubr.msk.bf16.vlgmr.msra.gmra.mxu0 %vm487_vm2, %v5785_v30  ;;  %4830 = vmatmul.mubr.msk.bf16.vlgmr.msra.gmra.mxu1 %vm487_vm2, %v5785_v30 }
 0x2b0   : > { %3374 = vmatpush1.bf16.msra.mxu0 %v5181_v24  ;;  %3415 = vmatpush1.bf16.msra.mxu1 %v5184_v25  ;;  %v6097_v24 = vsub.s32 5, %v1617_v4  ;;  %v6099_v25 = vsub.s32 7, %v1617_v4 }
 0x2b1   : > { %3375 = vmatprep.subr.bf16.mxu0 %v5189_v26  ;;  %3416 = vmatprep.subr.bf16.mxu1 %v5192_v27 }
 0x2b2   : > { %3393 = vmatprep.mubr.bf16.mxu0 %v5525_v22  ;;  %3434 = vmatprep.mubr.bf16.mxu1 %v5525_v22 }
 0x2b4   : > { %3376 = vmatpush1.bf16.msra.mxu0 %v5187_v28  ;;  %3417 = vmatpush1.bf16.msra.mxu1 %v5190_v29 }
 0x2b5   : > { %3455 = vmatprep.subr.bf16.mxu0 %v5195_v31  ;;  %3496 = vmatprep.subr.bf16.mxu1 %v5198_v32  ;;  %v6101_v32 = vsub.s32 %v3904_v17, %v1617_v4 }
 0x2b7   : > { %4831 = vmatmul.mubr.msk.bf16.vlgmr.msra.gmra.mxu0 %vm487_vm2, %v5785_v30  ;;  %4832 = vmatmul.mubr.msk.bf16.vlgmr.msra.gmra.mxu1 %vm487_vm2, %v5785_v30 }
 0x2b8   : > { %3456 = vmatpush1.bf16.msra.mxu0 %v5193_v33  ;;  %3497 = vmatpush1.bf16.msra.mxu1 %v5196_v34 }
 0x2b9   : > { %3457 = vmatprep.subr.bf16.mxu0 %v5201_v35  ;;  %3498 = vmatprep.subr.bf16.mxu1 %v5204_v36 }
 0x2ba   : > { %3475 = vmatprep.mubr.bf16.mxu0 %v5525_v22  ;;  %3516 = vmatprep.mubr.bf16.mxu1 %v5525_v22 }
 0x2bc   : > { %3458 = vmatpush1.bf16.msra.mxu0 %v5199_v37  ;;  %3499 = vmatpush1.bf16.msra.mxu1 %v5202_v38 }
 0x2bd   : > { %3537 = vmatprep.subr.bf16.mxu0 %v5207_v39  ;;  %3578 = vmatprep.subr.bf16.mxu1 %v5210_v40 }
 0x2bf   : > { %4833 = vmatmul.mubr.msk.bf16.vlgmr.msra.gmra.mxu0 %vm487_vm2, %v5785_v30  ;;  %4834 = vmatmul.mubr.msk.bf16.vlgmr.msra.gmra.mxu1 %vm487_vm2, %v5785_v30 }
 0x2c0   : > { %3538 = vmatpush1.bf16.msra.mxu0 %v5205_v41  ;;  %3579 = vmatpush1.bf16.msra.mxu1 %v5208_v42 }
 0x2c1   : > { %3539 = vmatprep.subr.bf16.mxu0 %v5213_v43  ;;  %3580 = vmatprep.subr.bf16.mxu1 %v5216_v44 }
 0x2c2   : > { %3557 = vmatprep.mubr.bf16.mxu0 %v5525_v22  ;;  %3598 = vmatprep.mubr.bf16.mxu1 %v5525_v22 }
 0x2c4   : > { %3540 = vmatpush1.bf16.msra.mxu0 %v5211_v45  ;;  %3581 = vmatpush1.bf16.msra.mxu1 %v5214_v46 }
 0x2c5   : > { %3619 = vmatprep.subr.bf16.mxu0 %v5219_v47  ;;  %3660 = vmatprep.subr.bf16.mxu1 %v5222_v48 }
 0x2c7   : > { %4835 = vmatmul.mubr.msk.bf16.vlgmr.msra.gmra.mxu0 %vm487_vm2, %v5785_v30  ;;  %4836 = vmatmul.mubr.msk.bf16.vlgmr.msra.gmra.mxu1 %vm487_vm2, %v5785_v30 }
 0x2c8   : > { %3620 = vmatpush1.bf16.msra.mxu0 %v5217_v49  ;;  %3661 = vmatpush1.bf16.msra.mxu1 %v5220_v50 }
 0x2c9   : > { %3621 = vmatprep.subr.bf16.mxu0 %v5225_v51  ;;  %3662 = vmatprep.subr.bf16.mxu1 %v5228_v52 }
 0x2ca   : > { %3639 = vmatprep.mubr.bf16.mxu0 %v5525_v22  ;;  %3680 = vmatprep.mubr.bf16.mxu1 %v5525_v22 }
 0x2cc   : > { %3622 = vmatpush1.bf16.msra.mxu0 %v5223_v53  ;;  %3663 = vmatpush1.bf16.msra.mxu1 %v5226_v54  ;;  %v735_v54 = vld [vmem:[%s6086_s15 + $0x8] sm:$0xff] }
 0x2cd   : > { %3701 = vmatprep.subr.bf16.mxu0 %v5231_v55  ;;  %3742 = vmatprep.subr.bf16.mxu1 %v5234_v56 }
 0x2cf   : > { %4837 = vmatmul.mubr.msk.bf16.vlgmr.msra.gmra.mxu0 %vm487_vm2, %v5785_v30  ;;  %4838 = vmatmul.mubr.msk.bf16.vlgmr.msra.gmra.mxu1 %vm487_vm2, %v5785_v30 }
 0x2d0   : > { %3702 = vmatpush1.bf16.msra.mxu0 %v5229_v57  ;;  %3743 = vmatpush1.bf16.msra.mxu1 %v5232_v58  ;;  %v1655_v57 = vrot.slane %v735_v54, %v6076_v5 }
 0x2d1   : > { %3703 = vmatprep.subr.bf16.mxu0 %v5237_v59  ;;  %3744 = vmatprep.subr.bf16.mxu1 %v5240_v60 }
 0x2d2   : > { %3721 = vmatprep.mubr.bf16.mxu0 %v5525_v22  ;;  %3762 = vmatprep.mubr.bf16.mxu1 %v5525_v22 }
 0x2d4   : > { %3704 = vmatpush1.bf16.msra.mxu0 %v5235_v61  ;;  %3745 = vmatpush1.bf16.msra.mxu1 %v5238_v62  ;;  %v1663_v61 = vrot.slane %v735_v54, %v6078_v6  ;;  %v1651_v62 = vrot.slane %v735_v54, %v6080_v7 }
 0x2d5   : > { %3783 = vmatprep.subr.bf16.mxu0 %v5243_v63 }
 0x2d7   : > { %4839 = vmatmul.mubr.msk.bf16.vlgmr.msra.gmra.mxu0 %vm487_vm2, %v5785_v30  ;;  %4840 = vmatmul.mubr.msk.bf16.vlgmr.msra.gmra.mxu1 %vm487_vm2, %v5785_v30 }
 0x2d8   : > { %3784 = vmatpush1.bf16.msra.mxu0 %v5241_v0  ;;  %3803 = vmatprep.mubr.bf16.mxu0 %v5525_v22  ;;  %v734_v22 = vld [vmem:[%s6086_s15] sm:$0xff]  ;;  %v1659_v0 = vrot.slane %v735_v54, %v6082_v8 }
 0x2d9   : > { %3785 = vmatprep.subr.bf16.mxu0 %v5246_v1  ;;  %v1631_v11 = vrot.slane %v734_v22, %v6078_v6  ;;  %v1619_v12 = vrot.slane %v734_v22, %v6080_v7  ;;  %v1627_v14 = vrot.slane %v734_v22, %v6082_v8  ;;  %v1635_v36 = vrot.slane %v734_v22, %v6093_v19 }
 0x2da   : > { %v1643_v37 = vrot.slane %v734_v22, %v6095_v20  ;;  %v1639_v38 = vrot.slane %v734_v22, %v6097_v24  ;;  %v1647_v39 = vrot.slane %v734_v22, %v6099_v25 }
 0x2dc   : > { %3786 = vmatpush1.bf16.msra.mxu0 %v5244_v2 }
 0x2df   : > { %4841 = vmatmul.mubr.msk.bf16.vlgmr.msra.gmra.mxu0 %vm487_vm2, %v5785_v30  ;;  %v1623_v30 = vrot.slane %v734_v22, %v6076_v5 }
 0x2f7   : > { %v2083_v13 = vpop.f32.mrf.mxu0  ;;  %v2124_v15 = vpop.f32.mrf.mxu1 }
 0x2f8   : > { %v2084_v26 = vadd.f32 %v2083_v13, %v1619_v12  ;;  %v2125_v27 = vadd.f32 %v2124_v15, %v1627_v14 }
 0x2f9   : > { %v2085_v16 = vpop.f32.mrf.mxu0  ;;  %v2126_v18 = vpop.f32.mrf.mxu1 }
 0x2fa   : > { %v2086_v21 = vadd.f32 %v2085_v16, %v1623_v30  ;;  %v2127_v23 = vadd.f32 %v2126_v18, %v1631_v11 }
 0x2fb   : > { %v2087_v28 = vpop.f32.mrf.mxu0  ;;  %v2128_v29 = vpop.f32.mrf.mxu1 }
 0x2fc   : > { %v3898_v31 = vcombine.low %v2084_v26, %v2086_v21  ;;  %v3899_v33 = vcombine.low %v2125_v27, %v2127_v23  ;;  %v1667_v26 = vrot.slane %v735_v54, %v6093_v19  ;;  %v1675_v27 = vrot.slane %v735_v54, %v6095_v20 }
 0x2fd   : > { %v2088_v34 = vpop.f32.mrf.mxu0  ;;  %v2129_v35 = vpop.f32.mrf.mxu1  ;;  %v1671_v28 = vrot.slane %v735_v54, %v6097_v24  ;;  %v1679_v29 = vrot.slane %v735_v54, %v6099_v25 }
 0x2fe   : > { %v3908_v42 = vrot.slane %v3898_v31, %v6101_v32  ;;  %v3915_v43 = vrot.slane %v3899_v33, %v6101_v32 }
 0x2ff   : > { %v2165_v40 = vpop.f32.mrf.mxu0  ;;  %v2206_v41 = vpop.f32.mrf.mxu1 }
 0x300   : > { %v2166_v46 = vadd.f32 %v2165_v40, %v1635_v36  ;;  %v2207_v47 = vadd.f32 %v2206_v41, %v1643_v37  ;;  %v3930_v58 = vcombine.low %v3908_v42, %v3915_v43 }
 0x301   : > { %v2167_v44 = vpop.f32.mrf.mxu0  ;;  %v2208_v45 = vpop.f32.mrf.mxu1 }
 0x302   : > { %v2168_v48 = vadd.f32 %v2167_v44, %v1639_v38  ;;  %v2209_v49 = vadd.f32 %v2208_v45, %v1647_v39  ;;  %v3938_v9 = vrot.slane %v3930_v58, %v6101_v32 }
 0x303   : > { %v2169_v50 = vpop.f32.mrf.mxu0  ;;  %v2210_v51 = vpop.f32.mrf.mxu1 }
 0x304   : > { %v3900_v52 = vcombine.low %v2166_v46, %v2168_v48  ;;  %v3901_v53 = vcombine.low %v2207_v47, %v2209_v49  ;;  %v736_v46 = vld [vmem:[%s6086_s15 + $0x10] sm:$0xff] }
 0x305   : > { %v2170_v55 = vpop.f32.mrf.mxu0  ;;  %v2211_v56 = vpop.f32.mrf.mxu1  ;;  %v1687_v49 = vrot.slane %v736_v46, %v6076_v5  ;;  %v1683_v54 = vrot.slane %v736_v46, %v6080_v7 }
 0x306   : > { %v3922_v59 = vrot.slane %v3900_v52, %v6101_v32  ;;  %v3929_v60 = vrot.slane %v3901_v53, %v6101_v32  ;;  %v1695_v53 = vrot.slane %v736_v46, %v6078_v6  ;;  %v1691_v56 = vrot.slane %v736_v46, %v6082_v8 }
 0x307   : > { %v2247_v63 = vpop.f32.mrf.mxu0  ;;  %v2288_v1 = vpop.f32.mrf.mxu1 }
 0x308   : > { %v3931_v2 = vcombine.low %v3922_v59, %v3929_v60  ;;  %v2248_v12 = vadd.f32 %v2247_v63, %v1651_v62  ;;  %v2289_v13 = vadd.f32 %v2288_v1, %v1659_v0 }
 0x309   : > { %v2249_v4 = vpop.f32.mrf.mxu0  ;;  %v2290_v22 = vpop.f32.mrf.mxu1 }
 0x30a   : > { %v3945_v10 = vrot.slane %v3931_v2, %v6101_v32  ;;  %v2250_v30 = vadd.f32 %v2249_v4, %v1655_v57  ;;  %v2291_v11 = vadd.f32 %v2290_v22, %v1663_v61 }
 0x30b   : > { %v2251_v14 = vpop.f32.mrf.mxu0  ;;  %v2292_v15 = vpop.f32.mrf.mxu1 }
 0x30c   : > { %v3946_v16 = vcombine.low %v3938_v9, %v3945_v10  ;;  %v3947_v17 = vcombine.low %v2248_v12, %v2250_v30  ;;  %v3948_v18 = vcombine.low %v2289_v13, %v2291_v11  ;;  %v1699_v13 = vrot.slane %v736_v46, %v6093_v19 }
 0x30d   : > { %v2252_v21 = vpop.f32.mrf.mxu0  ;;  %v2293_v23 = vpop.f32.mrf.mxu1  ;;  %v1707_v14 = vrot.slane %v736_v46, %v6095_v20  ;;  %v1703_v15 = vrot.slane %v736_v46, %v6097_v24 }
 0x30e   : > { %4439 = vst [vmem:[%s6120_s18] sm:$0xff] %v3946_v16  ;;  %v3957_v34 = vrot.slane %v3947_v17, %v6101_v32  ;;  %v3964_v35 = vrot.slane %v3948_v18, %v6101_v32  ;;  %v1711_v16 = vrot.slane %v736_v46, %v6099_v25 }
 0x30f   : > { %v2329_v31 = vpop.f32.mrf.mxu0  ;;  %v2370_v33 = vpop.f32.mrf.mxu1 }
 0x310   : > { %v2330_v38 = vadd.f32 %v2329_v31, %v1667_v26  ;;  %v2371_v39 = vadd.f32 %v2370_v33, %v1675_v27  ;;  %v3979_v50 = vcombine.low %v3957_v34, %v3964_v35 }
 0x311   : > { %v2331_v36 = vpop.f32.mrf.mxu0  ;;  %v2372_v37 = vpop.f32.mrf.mxu1 }
 0x312   : > { %v2332_v40 = vadd.f32 %v2331_v36, %v1671_v28  ;;  %v2373_v41 = vadd.f32 %v2372_v37, %v1679_v29  ;;  %v3987_v61 = vrot.slane %v3979_v50, %v6101_v32 }
 0x313   : > { %v2333_v42 = vpop.f32.mrf.mxu0  ;;  %v2374_v43 = vpop.f32.mrf.mxu1 }
 0x314   : > { %v3949_v44 = vcombine.low %v2330_v38, %v2332_v40  ;;  %v3950_v45 = vcombine.low %v2371_v39, %v2373_v41  ;;  %v737_v38 = vld [vmem:[%s6086_s15 + $0x18] sm:$0xff] }
 0x315   : > { %v2334_v47 = vpop.f32.mrf.mxu0  ;;  %v2375_v48 = vpop.f32.mrf.mxu1  ;;  %v1719_v41 = vrot.slane %v737_v38, %v6076_v5  ;;  %v1715_v46 = vrot.slane %v737_v38, %v6080_v7 }
 0x316   : > { %v3971_v51 = vrot.slane %v3949_v44, %v6101_v32  ;;  %v3978_v52 = vrot.slane %v3950_v45, %v6101_v32  ;;  %v1727_v45 = vrot.slane %v737_v38, %v6078_v6  ;;  %v1723_v48 = vrot.slane %v737_v38, %v6082_v8 }
 0x317   : > { %v2411_v55 = vpop.f32.mrf.mxu0  ;;  %v2452_v57 = vpop.f32.mrf.mxu1 }
 0x318   : > { %v3980_v58 = vcombine.low %v3971_v51, %v3978_v52  ;;  %v2412_v1 = vadd.f32 %v2411_v55, %v1683_v54  ;;  %v2453_v2 = vadd.f32 %v2452_v57, %v1691_v56 }
 0x319   : > { %v2413_v59 = vpop.f32.mrf.mxu0  ;;  %v2454_v60 = vpop.f32.mrf.mxu1 }
 0x31a   : > { %v3994_v62 = vrot.slane %v3980_v58, %v6101_v32  ;;  %v2414_v63 = vadd.f32 %v2413_v59, %v1687_v49  ;;  %v2455_v0 = vadd.f32 %v2454_v60, %v1695_v53 }
 0x31b   : > { %v2415_v4 = vpop.f32.mrf.mxu0  ;;  %v2456_v22 = vpop.f32.mrf.mxu1 }
 0x31c   : > { %v3995_v9 = vcombine.low %v3987_v61, %v3994_v62  ;;  %v3996_v10 = vcombine.low %v2412_v1, %v2414_v63  ;;  %v3997_v30 = vcombine.low %v2453_v2, %v2455_v0  ;;  %v1731_v2 = vrot.slane %v737_v38, %v6093_v19 }
 0x31d   : > { %v2416_v11 = vpop.f32.mrf.mxu0  ;;  %v2457_v12 = vpop.f32.mrf.mxu1  ;;  %v1739_v4 = vrot.slane %v737_v38, %v6095_v20  ;;  %v1735_v22 = vrot.slane %v737_v38, %v6097_v24 }
 0x31e   : > { %4440 = vst [vmem:[%s6120_s18 + $0x8] sm:$0xff] %v3995_v9  ;;  %v4006_v21 = vrot.slane %v3996_v10, %v6101_v32  ;;  %v4013_v23 = vrot.slane %v3997_v30, %v6101_v32  ;;  %v1743_v9 = vrot.slane %v737_v38, %v6099_v25 }
 0x31f   : > { %v2493_v17 = vpop.f32.mrf.mxu0  ;;  %v2534_v18 = vpop.f32.mrf.mxu1 }
 0x320   : > { %v2494_v28 = vadd.f32 %v2493_v17, %v1699_v13  ;;  %v2535_v29 = vadd.f32 %v2534_v18, %v1707_v14  ;;  %v4028_v42 = vcombine.low %v4006_v21, %v4013_v23 }
 0x321   : > { %v2495_v26 = vpop.f32.mrf.mxu0  ;;  %v2536_v27 = vpop.f32.mrf.mxu1 }
 0x322   : > { %v2496_v31 = vadd.f32 %v2495_v26, %v1703_v15  ;;  %v2537_v33 = vadd.f32 %v2536_v27, %v1711_v16  ;;  %v4036_v53 = vrot.slane %v4028_v42, %v6101_v32 }
 0x323   : > { %v2497_v34 = vpop.f32.mrf.mxu0  ;;  %v2538_v35 = vpop.f32.mrf.mxu1 }
 0x324   : > { %v3998_v36 = vcombine.low %v2494_v28, %v2496_v31  ;;  %v3999_v37 = vcombine.low %v2535_v29, %v2537_v33  ;;  %v738_v28 = vld [vmem:[%s6086_s15 + $0x20] sm:$0xff] }
 0x325   : > { %v2498_v39 = vpop.f32.mrf.mxu0  ;;  %v2539_v40 = vpop.f32.mrf.mxu1  ;;  %v1751_v33 = vrot.slane %v738_v28, %v6076_v5  ;;  %v1747_v38 = vrot.slane %v738_v28, %v6080_v7 }
 0x326   : > { %v4020_v43 = vrot.slane %v3998_v36, %v6101_v32  ;;  %v4027_v44 = vrot.slane %v3999_v37, %v6101_v32  ;;  %v1759_v37 = vrot.slane %v738_v28, %v6078_v6  ;;  %v1755_v40 = vrot.slane %v738_v28, %v6082_v8 }
 0x327   : > { %v2575_v47 = vpop.f32.mrf.mxu0  ;;  %v2616_v49 = vpop.f32.mrf.mxu1 }
 0x328   : > { %v4029_v50 = vcombine.low %v4020_v43, %v4027_v44  ;;  %v2576_v57 = vadd.f32 %v2575_v47, %v1715_v46  ;;  %v2617_v58 = vadd.f32 %v2616_v49, %v1723_v48 }
 0x329   : > { %v2577_v51 = vpop.f32.mrf.mxu0  ;;  %v2618_v52 = vpop.f32.mrf.mxu1 }
 0x32a   : > { %v4043_v54 = vrot.slane %v4029_v50, %v6101_v32  ;;  %v2578_v55 = vadd.f32 %v2577_v51, %v1719_v41  ;;  %v2619_v56 = vadd.f32 %v2618_v52, %v1727_v45 }
 0x32b   : > { %v2579_v59 = vpop.f32.mrf.mxu0  ;;  %v2620_v60 = vpop.f32.mrf.mxu1 }
 0x32c   : > { %v4044_v61 = vcombine.low %v4036_v53, %v4043_v54  ;;  %v4045_v62 = vcombine.low %v2576_v57, %v2578_v55  ;;  %v4046_v63 = vcombine.low %v2617_v58, %v2619_v56  ;;  %v1763_v58 = vrot.slane %v738_v28, %v6093_v19 }
 0x32d   : > { %v2580_v0 = vpop.f32.mrf.mxu0  ;;  %v2621_v1 = vpop.f32.mrf.mxu1  ;;  %v1771_v59 = vrot.slane %v738_v28, %v6095_v20  ;;  %v1767_v60 = vrot.slane %v738_v28, %v6097_v24 }
 0x32e   : > { %4441 = vst [vmem:[%s6120_s18 + $0x10] sm:$0xff] %v4044_v61  ;;  %v4055_v11 = vrot.slane %v4045_v62, %v6101_v32  ;;  %v4062_v12 = vrot.slane %v4046_v63, %v6101_v32  ;;  %v1775_v61 = vrot.slane %v738_v28, %v6099_v25 }
 0x32f   : > { %v2657_v10 = vpop.f32.mrf.mxu0  ;;  %v2698_v30 = vpop.f32.mrf.mxu1 }
 0x330   : > { %v2658_v15 = vadd.f32 %v2657_v10, %v1731_v2  ;;  %v2699_v16 = vadd.f32 %v2698_v30, %v1739_v4  ;;  %v4077_v34 = vcombine.low %v4055_v11, %v4062_v12 }
 0x331   : > { %v2659_v13 = vpop.f32.mrf.mxu0  ;;  %v2700_v14 = vpop.f32.mrf.mxu1 }
 0x332   : > { %v2660_v17 = vadd.f32 %v2659_v13, %v1735_v22  ;;  %v2701_v18 = vadd.f32 %v2700_v14, %v1743_v9  ;;  %v4085_v45 = vrot.slane %v4077_v34, %v6101_v32 }
 0x333   : > { %v2661_v21 = vpop.f32.mrf.mxu0  ;;  %v2702_v23 = vpop.f32.mrf.mxu1 }
 0x334   : > { %v4047_v26 = vcombine.low %v2658_v15, %v2660_v17  ;;  %v4048_v27 = vcombine.low %v2699_v16, %v2701_v18  ;;  %v739_v15 = vld [vmem:[%s6086_s15 + $0x28] sm:$0xff] }
 0x335   : > { %v2662_v29 = vpop.f32.mrf.mxu0  ;;  %v2703_v31 = vpop.f32.mrf.mxu1  ;;  %v1783_v18 = vrot.slane %v739_v15, %v6076_v5  ;;  %v1779_v28 = vrot.slane %v739_v15, %v6080_v7 }
 0x336   : > { %v4069_v35 = vrot.slane %v4047_v26, %v6101_v32  ;;  %v4076_v36 = vrot.slane %v4048_v27, %v6101_v32  ;;  %v1791_v27 = vrot.slane %v739_v15, %v6078_v6  ;;  %v1787_v31 = vrot.slane %v739_v15, %v6082_v8 }
 0x337   : > { %v2739_v39 = vpop.f32.mrf.mxu0  ;;  %v2780_v41 = vpop.f32.mrf.mxu1 }
 0x338   : > { %v4078_v42 = vcombine.low %v4069_v35, %v4076_v36  ;;  %v2740_v49 = vadd.f32 %v2739_v39, %v1747_v38  ;;  %v2781_v50 = vadd.f32 %v2780_v41, %v1755_v40 }
 0x339   : > { %v2741_v43 = vpop.f32.mrf.mxu0  ;;  %v2782_v44 = vpop.f32.mrf.mxu1 }
 0x33a   : > { %v4092_v46 = vrot.slane %v4078_v42, %v6101_v32  ;;  %v2742_v47 = vadd.f32 %v2741_v43, %v1751_v33  ;;  %v2783_v48 = vadd.f32 %v2782_v44, %v1759_v37 }
 0x33b   : > { %v2743_v51 = vpop.f32.mrf.mxu0  ;;  %v2784_v52 = vpop.f32.mrf.mxu1 }
 0x33c   : > { %v4093_v53 = vcombine.low %v4085_v45, %v4092_v46  ;;  %v4094_v54 = vcombine.low %v2740_v49, %v2742_v47  ;;  %v4095_v55 = vcombine.low %v2781_v50, %v2783_v48  ;;  %v1795_v50 = vrot.slane %v739_v15, %v6093_v19 }
 0x33d   : > { %v2744_v56 = vpop.f32.mrf.mxu0  ;;  %v2785_v57 = vpop.f32.mrf.mxu1  ;;  %v1803_v51 = vrot.slane %v739_v15, %v6095_v20  ;;  %v1799_v52 = vrot.slane %v739_v15, %v6097_v24 }
 0x33e   : > { %4442 = vst [vmem:[%s6120_s18 + $0x18] sm:$0xff] %v4093_v53  ;;  %v4104_v0 = vrot.slane %v4094_v54, %v6101_v32  ;;  %v4111_v1 = vrot.slane %v4095_v55, %v6101_v32  ;;  %v1807_v53 = vrot.slane %v739_v15, %v6099_v25 }
 0x33f   : > { %v2821_v62 = vpop.f32.mrf.mxu0  ;;  %v2862_v63 = vpop.f32.mrf.mxu1 }
 0x340   : > { %v2822_v22 = vadd.f32 %v2821_v62, %v1763_v58  ;;  %v2863_v9 = vadd.f32 %v2862_v63, %v1771_v59  ;;  %v4126_v21 = vcombine.low %v4104_v0, %v4111_v1 }
 0x341   : > { %v2823_v2 = vpop.f32.mrf.mxu0  ;;  %v2864_v4 = vpop.f32.mrf.mxu1 }
 0x342   : > { %v2824_v10 = vadd.f32 %v2823_v2, %v1767_v60  ;;  %v2865_v30 = vadd.f32 %v2864_v4, %v1775_v61  ;;  %v4134_v37 = vrot.slane %v4126_v21, %v6101_v32 }
 0x343   : > { %v2825_v11 = vpop.f32.mrf.mxu0  ;;  %v2866_v12 = vpop.f32.mrf.mxu1 }
 0x344   : > { %v4096_v13 = vcombine.low %v2822_v22, %v2824_v10  ;;  %v4097_v14 = vcombine.low %v2863_v9, %v2865_v30  ;;  %v740_v22 = vld [vmem:[%s6086_s15 + $0x30] sm:$0xff] }
 0x345   : > { %v2826_v16 = vpop.f32.mrf.mxu0  ;;  %v2867_v17 = vpop.f32.mrf.mxu1  ;;  %v1815_v30 = vrot.slane %v740_v22, %v6076_v5  ;;  %v1811_v15 = vrot.slane %v740_v22, %v6080_v7 }
 0x346   : > { %v4118_v23 = vrot.slane %v4096_v13, %v6101_v32  ;;  %v4125_v26 = vrot.slane %v4097_v14, %v6101_v32  ;;  %v1823_v14 = vrot.slane %v740_v22, %v6078_v6  ;;  %v1819_v17 = vrot.slane %v740_v22, %v6082_v8 }
 0x347   : > { %v2903_v29 = vpop.f32.mrf.mxu0  ;;  %v2944_v33 = vpop.f32.mrf.mxu1 }
 0x348   : > { %v4127_v34 = vcombine.low %v4118_v23, %v4125_v26  ;;  %v2904_v41 = vadd.f32 %v2903_v29, %v1779_v28  ;;  %v2945_v42 = vadd.f32 %v2944_v33, %v1787_v31 }
 0x349   : > { %v2905_v35 = vpop.f32.mrf.mxu0  ;;  %v2946_v36 = vpop.f32.mrf.mxu1 }
 0x34a   : > { %v4141_v38 = vrot.slane %v4127_v34, %v6101_v32  ;;  %v2906_v39 = vadd.f32 %v2905_v35, %v1783_v18  ;;  %v2947_v40 = vadd.f32 %v2946_v36, %v1791_v27 }
 0x34b   : > { %v2907_v43 = vpop.f32.mrf.mxu0  ;;  %v2948_v44 = vpop.f32.mrf.mxu1 }
 0x34c   : > { %v4142_v45 = vcombine.low %v4134_v37, %v4141_v38  ;;  %v4143_v46 = vcombine.low %v2904_v41, %v2906_v39  ;;  %v4144_v47 = vcombine.low %v2945_v42, %v2947_v40  ;;  %v1827_v42 = vrot.slane %v740_v22, %v6093_v19 }
 0x34d   : > { %v2908_v48 = vpop.f32.mrf.mxu0  ;;  %v2949_v49 = vpop.f32.mrf.mxu1  ;;  %v1835_v43 = vrot.slane %v740_v22, %v6095_v20  ;;  %v1831_v44 = vrot.slane %v740_v22, %v6097_v24 }
 0x34e   : > { %4443 = vst [vmem:[%s6120_s18 + $0x20] sm:$0xff] %v4142_v45  ;;  %v4153_v56 = vrot.slane %v4143_v46, %v6101_v32  ;;  %v4160_v57 = vrot.slane %v4144_v47, %v6101_v32  ;;  %v1839_v45 = vrot.slane %v740_v22, %v6099_v25 }
 0x34f   : > { %v2985_v54 = vpop.f32.mrf.mxu0  ;;  %v3026_v55 = vpop.f32.mrf.mxu1 }
 0x350   : > { %v2986_v60 = vadd.f32 %v2985_v54, %v1795_v50  ;;  %v3027_v61 = vadd.f32 %v3026_v55, %v1803_v51  ;;  %v4175_v11 = vcombine.low %v4153_v56, %v4160_v57 }
 0x351   : > { %v2987_v58 = vpop.f32.mrf.mxu0  ;;  %v3028_v59 = vpop.f32.mrf.mxu1 }
 0x352   : > { %v2988_v62 = vadd.f32 %v2987_v58, %v1799_v52  ;;  %v3029_v63 = vadd.f32 %v3028_v59, %v1807_v53  ;;  %v4183_v27 = vrot.slane %v4175_v11, %v6101_v32 }
 0x353   : > { %v2989_v0 = vpop.f32.mrf.mxu0  ;;  %v3030_v1 = vpop.f32.mrf.mxu1 }
 0x354   : > { %v4145_v2 = vcombine.low %v2986_v60, %v2988_v62  ;;  %v4146_v4 = vcombine.low %v3027_v61, %v3029_v63  ;;  %v741_v60 = vld [vmem:[%s6086_s15 + $0x38] sm:$0xff] }
 0x355   : > { %v2990_v9 = vpop.f32.mrf.mxu0  ;;  %v3031_v10 = vpop.f32.mrf.mxu1  ;;  %v1847_v63 = vrot.slane %v741_v60, %v6076_v5  ;;  %v1843_v22 = vrot.slane %v741_v60, %v6080_v7 }
 0x356   : > { %v4167_v12 = vrot.slane %v4145_v2, %v6101_v32  ;;  %v4174_v13 = vrot.slane %v4146_v4, %v6101_v32  ;;  %v1855_v4 = vrot.slane %v741_v60, %v6078_v6  ;;  %v1851_v10 = vrot.slane %v741_v60, %v6082_v8 }
 0x357   : > { %v3067_v16 = vpop.f32.mrf.mxu0  ;;  %v3108_v18 = vpop.f32.mrf.mxu1 }
 0x358   : > { %v4176_v21 = vcombine.low %v4167_v12, %v4174_v13  ;;  %v3068_v33 = vadd.f32 %v3067_v16, %v1811_v15  ;;  %v3109_v34 = vadd.f32 %v3108_v18, %v1819_v17 }
 0x359   : > { %v3069_v23 = vpop.f32.mrf.mxu0  ;;  %v3110_v26 = vpop.f32.mrf.mxu1 }
 0x35a   : > { %v4190_v28 = vrot.slane %v4176_v21, %v6101_v32  ;;  %v3070_v29 = vadd.f32 %v3069_v23, %v1815_v30  ;;  %v3111_v31 = vadd.f32 %v3110_v26, %v1823_v14 }
 0x35b   : > { %v3071_v35 = vpop.f32.mrf.mxu0  ;;  %v3112_v36 = vpop.f32.mrf.mxu1 }
 0x35c   : > { %v4191_v37 = vcombine.low %v4183_v27, %v4190_v28  ;;  %v4192_v38 = vcombine.low %v3068_v33, %v3070_v29  ;;  %v4193_v39 = vcombine.low %v3109_v34, %v3111_v31  ;;  %v1859_v34 = vrot.slane %v741_v60, %v6093_v19 }
 0x35d   : > { %v3072_v40 = vpop.f32.mrf.mxu0  ;;  %v3113_v41 = vpop.f32.mrf.mxu1  ;;  %v1867_v35 = vrot.slane %v741_v60, %v6095_v20  ;;  %v1863_v36 = vrot.slane %v741_v60, %v6097_v24 }
 0x35e   : > { %4444 = vst [vmem:[%s6120_s18 + $0x28] sm:$0xff] %v4191_v37  ;;  %v4202_v48 = vrot.slane %v4192_v38, %v6101_v32  ;;  %v4209_v49 = vrot.slane %v4193_v39, %v6101_v32  ;;  %v1871_v37 = vrot.slane %v741_v60, %v6099_v25 }
 0x35f   : > { %v3149_v46 = vpop.f32.mrf.mxu0  ;;  %v3190_v47 = vpop.f32.mrf.mxu1 }
 0x360   : > { %v3150_v52 = vadd.f32 %v3149_v46, %v1827_v42  ;;  %v3191_v53 = vadd.f32 %v3190_v47, %v1835_v43  ;;  %v4224_v0 = vcombine.low %v4202_v48, %v4209_v49 }
 0x361   : > { %v3151_v50 = vpop.f32.mrf.mxu0  ;;  %v3192_v51 = vpop.f32.mrf.mxu1 }
 0x362   : > { %v3152_v54 = vadd.f32 %v3151_v50, %v1831_v44  ;;  %v3193_v55 = vadd.f32 %v3192_v51, %v1839_v45  ;;  %v4232_v14 = vrot.slane %v4224_v0, %v6101_v32 }
 0x363   : > { %v3153_v56 = vpop.f32.mrf.mxu0  ;;  %v3194_v57 = vpop.f32.mrf.mxu1 }
 0x364   : > { %v4194_v58 = vcombine.low %v3150_v52, %v3152_v54  ;;  %v4195_v59 = vcombine.low %v3191_v53, %v3193_v55  ;;  %v742_v52 = vld [vmem:[%s6086_s15 + $0x40] sm:$0xff] }
 0x365   : > { %v3154_v61 = vpop.f32.mrf.mxu0  ;;  %v3195_v62 = vpop.f32.mrf.mxu1  ;;  %v1879_v55 = vrot.slane %v742_v52, %v6076_v5  ;;  %v1875_v60 = vrot.slane %v742_v52, %v6080_v7 }
 0x366   : > { %v4216_v1 = vrot.slane %v4194_v58, %v6101_v32  ;;  %v4223_v2 = vrot.slane %v4195_v59, %v6101_v32  ;;  %v1887_v59 = vrot.slane %v742_v52, %v6078_v6  ;;  %v1883_v62 = vrot.slane %v742_v52, %v6082_v8 }
 0x367   : > { %v3231_v9 = vpop.f32.mrf.mxu0  ;;  %v3272_v30 = vpop.f32.mrf.mxu1 }
 0x368   : > { %v4225_v11 = vcombine.low %v4216_v1, %v4223_v2  ;;  %v3232_v18 = vadd.f32 %v3231_v9, %v1843_v22  ;;  %v3273_v21 = vadd.f32 %v3272_v30, %v1851_v10 }
 0x369   : > { %v3233_v12 = vpop.f32.mrf.mxu0  ;;  %v3274_v13 = vpop.f32.mrf.mxu1 }
 0x36a   : > { %v4239_v15 = vrot.slane %v4225_v11, %v6101_v32  ;;  %v3234_v16 = vadd.f32 %v3233_v12, %v1847_v63  ;;  %v3275_v17 = vadd.f32 %v3274_v13, %v1855_v4 }
 0x36b   : > { %v3235_v23 = vpop.f32.mrf.mxu0  ;;  %v3276_v26 = vpop.f32.mrf.mxu1 }
 0x36c   : > { %v4240_v27 = vcombine.low %v4232_v14, %v4239_v15  ;;  %v4241_v28 = vcombine.low %v3232_v18, %v3234_v16  ;;  %v4242_v29 = vcombine.low %v3273_v21, %v3275_v17  ;;  %v1891_v21 = vrot.slane %v742_v52, %v6093_v19 }
 0x36d   : > { %v3236_v31 = vpop.f32.mrf.mxu0  ;;  %v3277_v33 = vpop.f32.mrf.mxu1  ;;  %v1899_v23 = vrot.slane %v742_v52, %v6095_v20  ;;  %v1895_v26 = vrot.slane %v742_v52, %v6097_v24 }
 0x36e   : > { %4445 = vst [vmem:[%s6120_s18 + $0x30] sm:$0xff] %v4240_v27  ;;  %v4251_v40 = vrot.slane %v4241_v28, %v6101_v32  ;;  %v4258_v41 = vrot.slane %v4242_v29, %v6101_v32  ;;  %v1903_v27 = vrot.slane %v742_v52, %v6099_v25 }
 0x36f   : > { %v3313_v38 = vpop.f32.mrf.mxu0  ;;  %v3354_v39 = vpop.f32.mrf.mxu1 }
 0x370   : > { %v3314_v44 = vadd.f32 %v3313_v38, %v1859_v34  ;;  %v3355_v45 = vadd.f32 %v3354_v39, %v1867_v35  ;;  %v4273_v56 = vcombine.low %v4251_v40, %v4258_v41 }
 0x371   : > { %v3315_v42 = vpop.f32.mrf.mxu0  ;;  %v3356_v43 = vpop.f32.mrf.mxu1 }
 0x372   : > { %v3316_v46 = vadd.f32 %v3315_v42, %v1863_v36  ;;  %v3357_v47 = vadd.f32 %v3356_v43, %v1871_v37  ;;  %v4281_v4 = vrot.slane %v4273_v56, %v6101_v32 }
 0x373   : > { %v3317_v48 = vpop.f32.mrf.mxu0  ;;  %v3358_v49 = vpop.f32.mrf.mxu1 }
 0x374   : > { %v4243_v50 = vcombine.low %v3314_v44, %v3316_v46  ;;  %v4244_v51 = vcombine.low %v3355_v45, %v3357_v47  ;;  %v743_v44 = vld [vmem:[%s6086_s15 + $0x48] sm:$0xff] }
 0x375   : > { %v3318_v53 = vpop.f32.mrf.mxu0  ;;  %v3359_v54 = vpop.f32.mrf.mxu1  ;;  %v1911_v47 = vrot.slane %v743_v44, %v6076_v5  ;;  %v1907_v52 = vrot.slane %v743_v44, %v6080_v7 }
 0x376   : > { %v4265_v57 = vrot.slane %v4243_v50, %v6101_v32  ;;  %v4272_v58 = vrot.slane %v4244_v51, %v6101_v32  ;;  %v1919_v51 = vrot.slane %v743_v44, %v6078_v6  ;;  %v1915_v54 = vrot.slane %v743_v44, %v6082_v8 }
 0x377   : > { %v3395_v61 = vpop.f32.mrf.mxu0  ;;  %v3436_v63 = vpop.f32.mrf.mxu1 }
 0x378   : > { %v4274_v0 = vcombine.low %v4265_v57, %v4272_v58  ;;  %v3396_v30 = vadd.f32 %v3395_v61, %v1875_v60  ;;  %v3437_v11 = vadd.f32 %v3436_v63, %v1883_v62 }
 0x379   : > { %v3397_v1 = vpop.f32.mrf.mxu0  ;;  %v3438_v2 = vpop.f32.mrf.mxu1 }
 0x37a   : > { %v4288_v22 = vrot.slane %v4274_v0, %v6101_v32  ;;  %v3398_v9 = vadd.f32 %v3397_v1, %v1879_v55  ;;  %v3439_v10 = vadd.f32 %v3438_v2, %v1887_v59 }
 0x37b   : > { %v3399_v12 = vpop.f32.mrf.mxu0  ;;  %v3440_v13 = vpop.f32.mrf.mxu1 }
 0x37c   : > { %v4289_v14 = vcombine.low %v4281_v4, %v4288_v22  ;;  %v4290_v15 = vcombine.low %v3396_v30, %v3398_v9  ;;  %v4291_v16 = vcombine.low %v3437_v11, %v3439_v10  ;;  %v1923_v11 = vrot.slane %v743_v44, %v6093_v19 }
 0x37d   : > { %v3400_v17 = vpop.f32.mrf.mxu0  ;;  %v3441_v18 = vpop.f32.mrf.mxu1  ;;  %v1931_v12 = vrot.slane %v743_v44, %v6095_v20  ;;  %v1927_v13 = vrot.slane %v743_v44, %v6097_v24 }
 0x37e   : > { %4446 = vst [vmem:[%s6120_s18 + $0x38] sm:$0xff] %v4289_v14  ;;  %v4300_v31 = vrot.slane %v4290_v15, %v6101_v32  ;;  %v4307_v33 = vrot.slane %v4291_v16, %v6101_v32  ;;  %v1935_v14 = vrot.slane %v743_v44, %v6099_v25 }
 0x37f   : > { %v3477_v28 = vpop.f32.mrf.mxu0  ;;  %v3518_v29 = vpop.f32.mrf.mxu1 }
 0x380   : > { %v3478_v36 = vadd.f32 %v3477_v28, %v1891_v21  ;;  %v3519_v37 = vadd.f32 %v3518_v29, %v1899_v23  ;;  %v4322_v48 = vcombine.low %v4300_v31, %v4307_v33  ;;  %v744_v31 = vld [vmem:[%s6086_s15 + $0x50] sm:$0x3f] }
 0x381   : > { %v3479_v34 = vpop.f32.mrf.mxu0  ;;  %v3520_v35 = vpop.f32.mrf.mxu1 }
 0x382   : > { %v3480_v38 = vadd.f32 %v3479_v34, %v1895_v26  ;;  %v3521_v39 = vadd.f32 %v3520_v35, %v1903_v27  ;;  %v4330_v59 = vrot.slane %v4322_v48, %v6101_v32 }
 0x383   : > { %v3481_v40 = vpop.f32.mrf.mxu0  ;;  %v3522_v41 = vpop.f32.mrf.mxu1 }
 0x384   : > { %v4292_v42 = vcombine.low %v3478_v36, %v3480_v38  ;;  %v4293_v43 = vcombine.low %v3519_v37, %v3521_v39  ;;  %v1939_v38 = vrot.slane %v744_v31, %v6080_v7  ;;  %v1947_v39 = vrot.slane %v744_v31, %v6082_v8 }
 0x385   : > { %v3482_v45 = vpop.f32.mrf.mxu0  ;;  %v3523_v46 = vpop.f32.mrf.mxu1 }
 0x386   : > { %v4314_v49 = vrot.slane %v4292_v42, %v6101_v32  ;;  %v4321_v50 = vrot.slane %v4293_v43, %v6101_v32  ;;  %v1943_v42 = vrot.slane %v744_v31, %v6076_v5  ;;  %v1951_v43 = vrot.slane %v744_v31, %v6078_v6 }
 0x387   : > { %v3559_v53 = vpop.f32.mrf.mxu0  ;;  %v3600_v55 = vpop.f32.mrf.mxu1 }
 0x388   : > { %v4323_v56 = vcombine.low %v4314_v49, %v4321_v50  ;;  %v3560_v63 = vadd.f32 %v3559_v53, %v1907_v52  ;;  %v3601_v0 = vadd.f32 %v3600_v55, %v1915_v54 }
 0x389   : > { %v3561_v57 = vpop.f32.mrf.mxu0  ;;  %v3602_v58 = vpop.f32.mrf.mxu1 }
 0x38a   : > { %v4337_v60 = vrot.slane %v4323_v56, %v6101_v32  ;;  %v3562_v61 = vadd.f32 %v3561_v57, %v1911_v47  ;;  %v3603_v62 = vadd.f32 %v3602_v58, %v1919_v51  ;;  %v1955_v58 = vrot.slane %v744_v31, %v6093_v19 }
 0x38b   : > { %v3563_v1 = vpop.f32.mrf.mxu0  ;;  %v3604_v2 = vpop.f32.mrf.mxu1 }
 0x38c   : > { %v4338_v4 = vcombine.low %v4330_v59, %v4337_v60  ;;  %v4339_v22 = vcombine.low %v3560_v63, %v3562_v61  ;;  %v4340_v9 = vcombine.low %v3601_v0, %v3603_v62  ;;  %v1959_v59 = vrot.slane %v744_v31, %v6097_v24 }
 0x38d   : > { %v3564_v10 = vpop.f32.mrf.mxu0  ;;  %v3605_v30 = vpop.f32.mrf.mxu1 }
 0x38e   : > { %4447 = vst [vmem:[%s6120_s18 + $0x40] sm:$0xff] %v4338_v4  ;;  %v4349_v17 = vrot.slane %v4339_v22, %v6101_v32  ;;  %v4356_v18 = vrot.slane %v4340_v9, %v6101_v32 }
 0x38f   : > { %v3641_v15 = vpop.f32.mrf.mxu0  ;;  %v3682_v16 = vpop.f32.mrf.mxu1 }
 0x390   : > { %v3642_v26 = vadd.f32 %v3641_v15, %v1923_v11  ;;  %v3683_v27 = vadd.f32 %v3682_v16, %v1931_v12  ;;  %v4371_v36 = vcombine.low %v4349_v17, %v4356_v18 }
 0x391   : > { %v3643_v21 = vpop.f32.mrf.mxu0  ;;  %v3684_v23 = vpop.f32.mrf.mxu1 }
 0x392   : > { %v3644_v28 = vadd.f32 %v3643_v21, %v1927_v13  ;;  %v3685_v29 = vadd.f32 %v3684_v23, %v1935_v14  ;;  %v4379_v47 = vrot.slane %v4371_v36, %v6101_v32 }
 0x393   : > { %v3645_v33 = vpop.f32.mrf.mxu0  ;;  %v3686_v34 = vpop.f32.mrf.mxu1 }
 0x394   : > { %v4341_v20 = vcombine.low %v3642_v26, %v3644_v28  ;;  %v4342_v35 = vcombine.low %v3683_v27, %v3685_v29 }
 0x395   : > { %v3646_v37 = vpop.f32.mrf.mxu0  ;;  %v3687_v25 = vpop.f32.mrf.mxu1 }
 0x396   : > { %v4363_v40 = vrot.slane %v4341_v20, %v6101_v32  ;;  %v4370_v41 = vrot.slane %v4342_v35, %v6101_v32 }
 0x397   : > { %v3723_v44 = vpop.f32.mrf.mxu0  ;;  %v3764_v45 = vpop.f32.mrf.mxu1 }
 0x398   : > { %v4372_v46 = vcombine.low %v4363_v40, %v4370_v41  ;;  %v3724_v48 = vadd.f32 %v3723_v44, %v1939_v38  ;;  %v3765_v8 = vadd.f32 %v3764_v45, %v1947_v39 }
 0x399   : > { %v3725_v49 = vpop.f32.mrf.mxu0  ;;  %v3766_v50 = vpop.f32.mrf.mxu1 }
 0x39a   : > { %v4386_v7 = vrot.slane %v4372_v46, %v6101_v32  ;;  %v3726_v51 = vadd.f32 %v3725_v49, %v1943_v42  ;;  %v3767_v52 = vadd.f32 %v3766_v50, %v1951_v43 }
 0x39b   : > { %v3727_v53 = vpop.f32.mrf.mxu0  ;;  %v3768_v54 = vpop.f32.mrf.mxu1 }
 0x39c   : > { %v4387_v55 = vcombine.low %v4379_v47, %v4386_v7  ;;  %v4388_v5 = vcombine.low %v3724_v48, %v3726_v51  ;;  %v4389_v56 = vcombine.low %v3765_v8, %v3767_v52 }
 0x39d   : > { %v3728_v6 = vpop.f32.mrf.mxu0  ;;  %v3769_v57 = vpop.f32.mrf.mxu1 }
 0x39e   : > { %4448 = vst [vmem:[%s6120_s18 + $0x48] sm:$0xff] %v4387_v55  ;;  %v4397_v61 = vrot.slane %v4388_v5, %v6101_v32  ;;  %v4404_v62 = vrot.slane %v4389_v56, %v6101_v32 }
 0x39f   : > { %v3805_v60 = vpop.f32.mrf.mxu0 }
 0x3a0   : > { %v3806_v0 = vadd.f32 %v3805_v60, %v1955_v58  ;;  %v4412_v4 = vcombine.low %v4397_v61, %v4404_v62 }
 0x3a1   : > { %v3807_v63 = vpop.f32.mrf.mxu0 }
 0x3a2   : > { %v3808_v1 = vadd.f32 %v3807_v63, %v1959_v59  ;;  %v4419_v19 = vrot.slane %v4412_v4, %v6101_v32 }
 0x3a3   : > { %v3809_v2 = vpop.f32.mrf.mxu0 }
 0x3a4   : > { %v4390_v22 = vcombine.low %v3806_v0, %v3808_v1 }
 0x3a5   : > { %v3810_v9 = vpop.f32.mrf.mxu0 }
 0x3a6   : > { %v4411_v10 = vrot.slane %v4390_v22, %v6101_v32 }
 0x3a8   : > { %v4426_v24 = vrot.slane %v4411_v10, %v6101_v32 }
 0x3aa   : > { %v4427_v30 = vcombine.low %v4419_v19, %v4426_v24 }
 0x3ac   : > { %4453 = vst.msk [vmem:[%s6120_s18 + $0x50] sm:$0x3f] %vm4451_vm3, %v4427_v30 }
 0x3ad   : > { %5446 = shalt.err (!%p5443_p7)
}
 0x3ae   : > { %s5447_s1 = scalar_lea.hbm %s4467_s5, 1376  ;;  %s5451_s17 = scalar_lea.hbm %s6319_s7, 2752 }
 0x3af   : > { %p5448_p10 = scmp.ne.s32.totalorder %s4467_s5, %s5447_s1  ;;  %p5452_p4 = scmp.lt.s32.totalorder %s4467_s5, %s6319_s7 }
 0x3b0   : > { %p5453_p9 = scmp.lt.s32.totalorder %s5451_s17, %s5447_s1 }
 0x3b1   : > { %p5449_p11 = pnand %p5448_p10, %p6355_p13 }
 0x3b2   : > { %p5454_p6 = por %p5453_p9, %p5452_p4 }
 0x3b3   : > { %p5450_p0 = pneg %p5449_p11 }
 0x3b5   : > { %p5455_p3 = pnand %p5454_p6, %p5450_p0 }
 0x3b7   : > { %5458 = shalt.err (!%p5455_p3)
}
 0x3b8   : > { %4902 = dma.vmem_to_hbm [thread:$0]  (%p6355_p13), %s4470_s21, 1376, %s4467_s5, %s4455_s11  }
 0x3b9 PF: > { %s4481_s30 = sand.u32 1, %s5497_s24   ;;  %p6356_p5 = scmp.ne.s32.totalorder %s6332_s8, 0 }
 0x3ba   : > { %p6357_p12 = scmp.ge.s32.totalorder %s5509_s27, 2  ;;  %s4482_s15 = scalar_lea.sflag [#allocation4], %s4481_s30 }
 0x3bc   : > { %p4928_p2 = pnand %p6357_p12, %p6356_p5 }
 0x3be   : > { %p4929_p1 = pneg %p4928_p2 }
 0x3c0   : > { %5492 = dma.done.wait (%p4929_p1), %s4482_s15, 1376  }
 0x3c1   : > { %5494 = vsyncadd (%p4929_p1), %s4482_s15, 4294965920  ;;  %s6358_s18 = sld [smem:[#allocation20_spill]]  ;;  %p23_p8 = scmp.ge.s32.totalorder %s5642_s29, 4  }
 0x3c2   : > { %s6359_s24 = smov %s5501_s25  ;;  %s6360_s25 = smov %s5505_s26 }
 0x3c3   : > { %s6362_s27 = smov %s5642_s29  ;;  %25 = sbr.rel (!%p23_p8) target bundleno = 12 (0xc), region = 125 }
 0x3c7   : > { %s6361_s26 = smov %s6358_s18 }
 0x3c8   :  { %4487 = vsyncpa [#allocation3], 1 }
 0x3c9   :  { %4489 = vsyncpa [#allocation3 + $0x1], 1 }
 0x3ca   :  { %4490 = vsyncpa [#allocation6], 1 }
 0x3cb   :  { %4491 = vsyncpa [#allocation9], 1 }
 0x3cc   :  { %4492 = vsyncpa [#allocation12], 1 }
 0x3cd   :  { %4494 = vsyncpa [#allocation12 + $0x1], 1 }
 0x3ce   :  { %4495 = vsyncpa [#allocation4], 1 }
 0x3cf   :  { %4497 = vsyncpa [#allocation4 + $0x1], 1 }

</bundles_post_ra>
